<compile_context>
chip_gen: v7x
topology: tpu7x:2x2x1
jax: 0.10.0
libtpu: 0.0.40
codegen_flags: <defaults>
</compile_context>

<pallas_src>
import jax
import jax.numpy as jnp
import numpy as np
from jax.experimental import pallas as pl
from jax.experimental.pallas import tpu as pltpu

# ---------------- model dims (small, consistent with the module) ----------------
B = 2            # true batch
BP = 8           # padded batch (full f32 sublane tile)
T = 8            # sequence length
E = 32           # embedding_length
H = 64           # hidden_size (hardcoded to 64 in the module)
G = 2 * H        # fused (fwd|bwd) state width = 128 lanes
VOCAB = 50       # vocab_size
LIN1 = 64        # linear1_output
LIN1P = 128      # lane-padded hidden width
OUT = 4          # output_size
OUTP = 128       # lane-padded output width


def _bilstm_kernel(tok_ref, emb_ref, wih_ref, whh_ref, b_ref,
                   w1_ref, b1_ref, w2_ref, b2_ref,
                   out_ref, x_ref, gx_ref):
    # ---- fused embedding gather: tokens in SMEM, table resident in VMEM ----
    x_ref[...] = jnp.zeros((T * BP, E), jnp.float32)      # zero the padded batch rows
    for t in range(T):
        for b in range(B):
            tok = tok_ref[b, t]
            x_ref[pl.ds(t * BP + b, 1), :] = emb_ref[tok]  # (1, E) row gather

    # ---- hoisted input projection: one (T*BP,E)@(E,8H) matmul, bias folded ----
    gx_ref[...] = (jnp.dot(x_ref[...], wih_ref[...],
                           preferred_element_type=jnp.float32) + b_ref[...])

    lane = jax.lax.broadcasted_iota(jnp.int32, (BP, 8 * H), 1)
    g_mask = (lane >= 4 * H) & (lane < 6 * H)     # tanh-gate block (both directions)
    fwd_mask = (lane & (G - 1)) < H               # fwd-direction lanes inside each gate block

    h = jnp.zeros((BP, G), jnp.float32)           # [h_fwd | h_bwd]
    c = jnp.zeros((BP, G), jnp.float32)
    sum_h = jnp.zeros((BP, G), jnp.float32)
    max_h = jnp.full((BP, G), -jnp.inf, jnp.float32)

    # Fully static unroll of the fused recurrence (T = 8).
    for t in range(T):
        tb = T - 1 - t
        # Forward columns read time step t, backward columns read T-1-t.
        gx_t = jnp.where(fwd_mask,
                         gx_ref[t * BP:(t + 1) * BP, :],
                         gx_ref[tb * BP:(tb + 1) * BP, :])
        gates = gx_t + jnp.dot(h, whh_ref[...], preferred_element_type=jnp.float32)
        s = jax.nn.sigmoid(gates)
        # g-gate pre-activations were pre-scaled by 2: tanh(x) == 2*sigmoid(2x) - 1.
        act = jnp.where(g_mask, 2.0 * s - 1.0, s)
        i_g = act[:, 0 * G:1 * G]
        f_g = act[:, 1 * G:2 * G]
        g_g = act[:, 2 * G:3 * G]
        o_g = act[:, 3 * G:4 * G]
        c = f_g * c + i_g * g_g
        h = o_g * jnp.tanh(c)
        # Pooling over time is order-invariant, so accumulating the backward
        # direction at the forward step index is fine.
        sum_h = sum_h + h
        max_h = jnp.maximum(max_h, h)

    # conc layout matches w1 rows: [avg_fwd | avg_bwd | max_fwd | max_bwd]
    conc = jnp.concatenate([sum_h * jnp.float32(1.0 / T), max_h], axis=1)   # (BP, 4H)
    hidden = jnp.maximum(
        jnp.dot(conc, w1_ref[...], preferred_element_type=jnp.float32) + b1_ref[...],
        0.0)
    out_ref[...] = (jnp.dot(hidden, w2_ref[...], preferred_element_type=jnp.float32)
                    + b2_ref[...])


def pack_params(p):
    """One-time weight reorg for the fused kernel (init-time host glue)."""
    def fuse_gates(wf, wb):
        parts = []
        for g in range(4):
            parts.append(wf[..., g * H:(g + 1) * H])
            parts.append(wb[..., g * H:(g + 1) * H])
        return jnp.concatenate(parts, axis=-1)

    wih = fuse_gates(p["wih_f"], p["wih_b"])      # (E, 8H)
    bias = fuse_gates(p["b_f"], p["b_b"])         # (1, 8H)

    # Block-structured recurrent weight: rows [h_f | h_b], gate-major columns.
    whh = jnp.zeros((G, 8 * H), jnp.float32)
    for g in range(4):
        whh = whh.at[0:H, g * G:g * G + H].set(p["whh_f"][:, g * H:(g + 1) * H])
        whh = whh.at[H:G, g * G + H:(g + 1) * G].set(p["whh_b"][:, g * H:(g + 1) * H])

    # Single-sigmoid trick: double the g-gate pre-activation columns.
    sg = lambda w: w.at[..., 4 * H:6 * H].multiply(2.0)
    wih, whh, bias = sg(wih), sg(whh), sg(bias)

    # Lane-dense MLP: zero-pad hidden width and output width to 128 lanes.
    w1 = jnp.zeros((4 * H, LIN1P), jnp.float32).at[:, :LIN1].set(p["w1"])
    b1 = jnp.zeros((1, LIN1P), jnp.float32).at[:, :LIN1].set(p["b1"])
    w2 = jnp.zeros((LIN1P, OUTP), jnp.float32).at[:LIN1, :OUT].set(p["w2"])
    b2 = jnp.zeros((1, OUTP), jnp.float32).at[:, :OUT].set(p["b2"])

    emb3 = p["embedding"].reshape(VOCAB, 1, E)    # dynamic leading-dim indexable in VMEM
    return {"emb3": emb3, "wih": wih, "whh": whh, "b": bias,
            "w1": w1, "b1": b1, "w2": w2, "b2": b2}


def bilstm_forward(tokens, packed):
    """tokens: (B, T) int32; packed: output of pack_params. Returns (B, OUT) f32."""
    vmem = pl.BlockSpec(memory_space=pltpu.MemorySpace.VMEM)
    smem = pl.BlockSpec(memory_space=pltpu.MemorySpace.SMEM)

    out = pl.pallas_call(
        _bilstm_kernel,
        out_shape=jax.ShapeDtypeStruct((BP, OUTP), jnp.float32),
        in_specs=[smem] + [vmem] * 8,
        out_specs=vmem,
        scratch_shapes=[pltpu.VMEM((T * BP, E), jnp.float32),        # gathered embeddings
                        pltpu.VMEM((T * BP, 8 * H), jnp.float32)],   # hoisted gate projections
    )(tokens.astype(jnp.int32),
      packed["emb3"], packed["wih"], packed["whh"], packed["b"],
      packed["w1"], packed["b1"], packed["w2"], packed["b2"])

    return out[:B, :OUT]


# --------------------------- pure-JAX reference ---------------------------
def bilstm_reference(tokens, params):
    emb = jnp.take(params["embedding"], tokens, axis=0)    # (B, T, E)

    def run_dir(x_seq, wih, whh, b):
        def cell(carry, x_t):
            h, c = carry
            gates = x_t @ wih + h @ whh + b[0]
            i = jax.nn.sigmoid(gates[:, 0 * H:1 * H])
            f = jax.nn.sigmoid(gates[:, 1 * H:2 * H])
            g = jnp.tanh(gates[:, 2 * H:3 * H])
            o = jax.nn.sigmoid(gates[:, 3 * H:4 * H])
            c_new = f * c + i * g
            h_new = o * jnp.tanh(c_new)
            return (h_new, c_new), h_new
        init = (jnp.zeros((B, H), jnp.float32), jnp.zeros((B, H), jnp.float32))
        _, hs = jax.lax.scan(cell, init, jnp.transpose(x_seq, (1, 0, 2)))
        return jnp.transpose(hs, (1, 0, 2))                # (B, T, H)

    h_fwd = run_dir(emb, params["wih_f"], params["whh_f"], params["b_f"])
    h_bwd = run_dir(emb[:, ::-1, :], params["wih_b"], params["whh_b"], params["b_b"])[:, ::-1, :]
    h_lstm = jnp.concatenate([h_fwd, h_bwd], axis=2)       # (B, T, 2H)
    avg_pool = jnp.mean(h_lstm, axis=1)
    max_pool = jnp.max(h_lstm, axis=1)
    conc = jnp.concatenate([avg_pool, max_pool], axis=1)
    hidden = jnp.maximum(conc @ params["w1"] + params["b1"][0], 0.0)
    return hidden @ params["w2"] + params["b2"][0]


def make_params(key):
    ks = jax.random.split(key, 12)
    u = lambda k, shape, s=0.1: jax.random.uniform(k, shape, jnp.float32, -s, s)
    return {
        "embedding": u(ks[0], (VOCAB, E), 0.5),
        "wih_f": u(ks[1], (E, 4 * H)), "whh_f": u(ks[2], (H, 4 * H)), "b_f": u(ks[3], (1, 4 * H)),
        "wih_b": u(ks[4], (E, 4 * H)), "whh_b": u(ks[5], (H, 4 * H)), "b_b": u(ks[6], (1, 4 * H)),
        "w1": u(ks[7], (4 * H, LIN1)), "b1": u(ks[8], (1, LIN1)),
        "w2": u(ks[9], (LIN1, OUT)), "b2": u(ks[10], (1, OUT)),
    }


if __name__ == "__main__":
    key = jax.random.PRNGKey(0)
    k_tok, k_par = jax.random.split(key)
    tokens = jax.random.randint(k_tok, (B, T), 0, VOCAB, dtype=jnp.int32)
    params = make_params(k_par)
    packed = pack_params(params)

    out = jax.block_until_ready(bilstm_forward(tokens, packed))
    ref = jax.block_until_ready(bilstm_reference(tokens, params))

    assert out.shape == (B, OUT)
    np.testing.assert_allclose(np.asarray(out), np.asarray(ref), rtol=1e-4, atol=1e-4)
    print("KERNEL_OK")
</pallas_src>

<mosaic_0001>
module attributes {stable_mosaic.version = 11 : i64} {
  func.func @_bilstm_kernel(%arg0: memref<2x8xi32, #tpu.memory_space<smem>>, %arg1: memref<50x1x32xf32, #tpu.memory_space<vmem>>, %arg2: memref<32x512xf32, #tpu.memory_space<vmem>>, %arg3: memref<128x512xf32, #tpu.memory_space<vmem>>, %arg4: memref<1x512xf32, #tpu.memory_space<vmem>>, %arg5: memref<256x128xf32, #tpu.memory_space<vmem>>, %arg6: memref<1x128xf32, #tpu.memory_space<vmem>>, %arg7: memref<128x128xf32, #tpu.memory_space<vmem>>, %arg8: memref<1x128xf32, #tpu.memory_space<vmem>>, %arg9: memref<8x128xf32, #tpu.memory_space<vmem>>, %arg10: memref<64x32xf32, #tpu.memory_space<vmem>>, %arg11: memref<64x512xf32, #tpu.memory_space<vmem>>) attributes {dimension_semantics = [], scalar_prefetch = 0 : i64, scratch_operands = 2 : i64, tpu.core_type = #tpu.core_type<tc>} {
    %cst = arith.constant 0.000000e+00 : f32
    %0 = vector.broadcast %cst : f32 to vector<64x32xf32>
    %c0 = arith.constant 0 : index
    %c0_0 = arith.constant 0 : index
    %1 = vector.load %arg10[%c0, %c0_0] : memref<64x32xf32, #tpu.memory_space<vmem>>, vector<64x32xf32>
    tpu.vector_store %arg10[%c0, %c0_0], %0 {strides = array<i32>} : memref<64x32xf32, #tpu.memory_space<vmem>>, vector<64x32xf32>,
    %c0_1 = arith.constant 0 : index
    %c0_2 = arith.constant 0 : index
    %2 = memref.load %arg0[%c0_1, %c0_2] : memref<2x8xi32, #tpu.memory_space<smem>>
    %3 = arith.index_cast %2 : i32 to index
    %c0_3 = arith.constant 0 : index
    %c0_4 = arith.constant 0 : index
    %4 = vector.load %arg1[%3, %c0_3, %c0_4] : memref<50x1x32xf32, #tpu.memory_space<vmem>>, vector<1x1x32xf32>
    %5 = vector.shape_cast %4 : vector<1x1x32xf32> to vector<1x32xf32>
    %c0_5 = arith.constant 0 : index
    %c0_6 = arith.constant 0 : index
    %6 = vector.load %arg10[%c0_5, %c0_6] : memref<64x32xf32, #tpu.memory_space<vmem>>, vector<1x32xf32>
    tpu.vector_store %arg10[%c0_5, %c0_6], %5 {strides = array<i32>} : memref<64x32xf32, #tpu.memory_space<vmem>>, vector<1x32xf32>,
    %c1 = arith.constant 1 : index
    %c0_7 = arith.constant 0 : index
    %7 = memref.load %arg0[%c1, %c0_7] : memref<2x8xi32, #tpu.memory_space<smem>>
    %8 = arith.index_cast %7 : i32 to index
    %c0_8 = arith.constant 0 : index
    %c0_9 = arith.constant 0 : index
    %9 = vector.load %arg1[%8, %c0_8, %c0_9] : memref<50x1x32xf32, #tpu.memory_space<vmem>>, vector<1x1x32xf32>
    %10 = vector.shape_cast %9 : vector<1x1x32xf32> to vector<1x32xf32>
    %c1_10 = arith.constant 1 : index
    %c0_11 = arith.constant 0 : index
    %11 = vector.load %arg10[%c1_10, %c0_11] : memref<64x32xf32, #tpu.memory_space<vmem>>, vector<1x32xf32>
    tpu.vector_store %arg10[%c1_10, %c0_11], %10 {strides = array<i32>} : memref<64x32xf32, #tpu.memory_space<vmem>>, vector<1x32xf32>,
    %c0_12 = arith.constant 0 : index
    %c1_13 = arith.constant 1 : index
    %12 = memref.load %arg0[%c0_12, %c1_13] : memref<2x8xi32, #tpu.memory_space<smem>>
    %13 = arith.index_cast %12 : i32 to index
    %c0_14 = arith.constant 0 : index
    %c0_15 = arith.constant 0 : index
    %14 = vector.load %arg1[%13, %c0_14, %c0_15] : memref<50x1x32xf32, #tpu.memory_space<vmem>>, vector<1x1x32xf32>
    %15 = vector.shape_cast %14 : vector<1x1x32xf32> to vector<1x32xf32>
    %c8 = arith.constant 8 : index
    %c0_16 = arith.constant 0 : index
    %16 = vector.load %arg10[%c8, %c0_16] : memref<64x32xf32, #tpu.memory_space<vmem>>, vector<1x32xf32>
    tpu.vector_store %arg10[%c8, %c0_16], %15 {strides = array<i32>} : memref<64x32xf32, #tpu.memory_space<vmem>>, vector<1x32xf32>,
    %c1_17 = arith.constant 1 : index
    %c1_18 = arith.constant 1 : index
    %17 = memref.load %arg0[%c1_17, %c1_18] : memref<2x8xi32, #tpu.memory_space<smem>>
    %18 = arith.index_cast %17 : i32 to index
    %c0_19 = arith.constant 0 : index
    %c0_20 = arith.constant 0 : index
    %19 = vector.load %arg1[%18, %c0_19, %c0_20] : memref<50x1x32xf32, #tpu.memory_space<vmem>>, vector<1x1x32xf32>
    %20 = vector.shape_cast %19 : vector<1x1x32xf32> to vector<1x32xf32>
    %c9 = arith.constant 9 : index
    %c0_21 = arith.constant 0 : index
    %21 = vector.load %arg10[%c9, %c0_21] : memref<64x32xf32, #tpu.memory_space<vmem>>, vector<1x32xf32>
    tpu.vector_store %arg10[%c9, %c0_21], %20 {strides = array<i32>} : memref<64x32xf32, #tpu.memory_space<vmem>>, vector<1x32xf32>,
    %c0_22 = arith.constant 0 : index
    %c2 = arith.constant 2 : index
    %22 = memref.load %arg0[%c0_22, %c2] : memref<2x8xi32, #tpu.memory_space<smem>>
    %23 = arith.index_cast %22 : i32 to index
    %c0_23 = arith.constant 0 : index
    %c0_24 = arith.constant 0 : index
    %24 = vector.load %arg1[%23, %c0_23, %c0_24] : memref<50x1x32xf32, #tpu.memory_space<vmem>>, vector<1x1x32xf32>
    %25 = vector.shape_cast %24 : vector<1x1x32xf32> to vector<1x32xf32>
    %c16 = arith.constant 16 : index
    %c0_25 = arith.constant 0 : index
    %26 = vector.load %arg10[%c16, %c0_25] : memref<64x32xf32, #tpu.memory_space<vmem>>, vector<1x32xf32>
    tpu.vector_store %arg10[%c16, %c0_25], %25 {strides = array<i32>} : memref<64x32xf32, #tpu.memory_space<vmem>>, vector<1x32xf32>,
    %c1_26 = arith.constant 1 : index
    %c2_27 = arith.constant 2 : index
    %27 = memref.load %arg0[%c1_26, %c2_27] : memref<2x8xi32, #tpu.memory_space<smem>>
    %28 = arith.index_cast %27 : i32 to index
    %c0_28 = arith.constant 0 : index
    %c0_29 = arith.constant 0 : index
    %29 = vector.load %arg1[%28, %c0_28, %c0_29] : memref<50x1x32xf32, #tpu.memory_space<vmem>>, vector<1x1x32xf32>
    %30 = vector.shape_cast %29 : vector<1x1x32xf32> to vector<1x32xf32>
    %c17 = arith.constant 17 : index
    %c0_30 = arith.constant 0 : index
    %31 = vector.load %arg10[%c17, %c0_30] : memref<64x32xf32, #tpu.memory_space<vmem>>, vector<1x32xf32>
    tpu.vector_store %arg10[%c17, %c0_30], %30 {strides = array<i32>} : memref<64x32xf32, #tpu.memory_space<vmem>>, vector<1x32xf32>,
    %c0_31 = arith.constant 0 : index
    %c3 = arith.constant 3 : index
    %32 = memref.load %arg0[%c0_31, %c3] : memref<2x8xi32, #tpu.memory_space<smem>>
    %33 = arith.index_cast %32 : i32 to index
    %c0_32 = arith.constant 0 : index
    %c0_33 = arith.constant 0 : index
    %34 = vector.load %arg1[%33, %c0_32, %c0_33] : memref<50x1x32xf32, #tpu.memory_space<vmem>>, vector<1x1x32xf32>
    %35 = vector.shape_cast %34 : vector<1x1x32xf32> to vector<1x32xf32>
    %c24 = arith.constant 24 : index
    %c0_34 = arith.constant 0 : index
    %36 = vector.load %arg10[%c24, %c0_34] : memref<64x32xf32, #tpu.memory_space<vmem>>, vector<1x32xf32>
    tpu.vector_store %arg10[%c24, %c0_34], %35 {strides = array<i32>} : memref<64x32xf32, #tpu.memory_space<vmem>>, vector<1x32xf32>,
    %c1_35 = arith.constant 1 : index
    %c3_36 = arith.constant 3 : index
    %37 = memref.load %arg0[%c1_35, %c3_36] : memref<2x8xi32, #tpu.memory_space<smem>>
    %38 = arith.index_cast %37 : i32 to index
    %c0_37 = arith.constant 0 : index
    %c0_38 = arith.constant 0 : index
    %39 = vector.load %arg1[%38, %c0_37, %c0_38] : memref<50x1x32xf32, #tpu.memory_space<vmem>>, vector<1x1x32xf32>
    %40 = vector.shape_cast %39 : vector<1x1x32xf32> to vector<1x32xf32>
    %c25 = arith.constant 25 : index
    %c0_39 = arith.constant 0 : index
    %41 = vector.load %arg10[%c25, %c0_39] : memref<64x32xf32, #tpu.memory_space<vmem>>, vector<1x32xf32>
    tpu.vector_store %arg10[%c25, %c0_39], %40 {strides = array<i32>} : memref<64x32xf32, #tpu.memory_space<vmem>>, vector<1x32xf32>,
    %c0_40 = arith.constant 0 : index
    %c4 = arith.constant 4 : index
    %42 = memref.load %arg0[%c0_40, %c4] : memref<2x8xi32, #tpu.memory_space<smem>>
    %43 = arith.index_cast %42 : i32 to index
    %c0_41 = arith.constant 0 : index
    %c0_42 = arith.constant 0 : index
    %44 = vector.load %arg1[%43, %c0_41, %c0_42] : memref<50x1x32xf32, #tpu.memory_space<vmem>>, vector<1x1x32xf32>
    %45 = vector.shape_cast %44 : vector<1x1x32xf32> to vector<1x32xf32>
    %c32 = arith.constant 32 : index
    %c0_43 = arith.constant 0 : index
    %46 = vector.load %arg10[%c32, %c0_43] : memref<64x32xf32, #tpu.memory_space<vmem>>, vector<1x32xf32>
    tpu.vector_store %arg10[%c32, %c0_43], %45 {strides = array<i32>} : memref<64x32xf32, #tpu.memory_space<vmem>>, vector<1x32xf32>,
    %c1_44 = arith.constant 1 : index
    %c4_45 = arith.constant 4 : index
    %47 = memref.load %arg0[%c1_44, %c4_45] : memref<2x8xi32, #tpu.memory_space<smem>>
    %48 = arith.index_cast %47 : i32 to index
    %c0_46 = arith.constant 0 : index
    %c0_47 = arith.constant 0 : index
    %49 = vector.load %arg1[%48, %c0_46, %c0_47] : memref<50x1x32xf32, #tpu.memory_space<vmem>>, vector<1x1x32xf32>
    %50 = vector.shape_cast %49 : vector<1x1x32xf32> to vector<1x32xf32>
    %c33 = arith.constant 33 : index
    %c0_48 = arith.constant 0 : index
    %51 = vector.load %arg10[%c33, %c0_48] : memref<64x32xf32, #tpu.memory_space<vmem>>, vector<1x32xf32>
    tpu.vector_store %arg10[%c33, %c0_48], %50 {strides = array<i32>} : memref<64x32xf32, #tpu.memory_space<vmem>>, vector<1x32xf32>,
    %c0_49 = arith.constant 0 : index
    %c5 = arith.constant 5 : index
    %52 = memref.load %arg0[%c0_49, %c5] : memref<2x8xi32, #tpu.memory_space<smem>>
    %53 = arith.index_cast %52 : i32 to index
    %c0_50 = arith.constant 0 : index
    %c0_51 = arith.constant 0 : index
    %54 = vector.load %arg1[%53, %c0_50, %c0_51] : memref<50x1x32xf32, #tpu.memory_space<vmem>>, vector<1x1x32xf32>
    %55 = vector.shape_cast %54 : vector<1x1x32xf32> to vector<1x32xf32>
    %c40 = arith.constant 40 : index
    %c0_52 = arith.constant 0 : index
    %56 = vector.load %arg10[%c40, %c0_52] : memref<64x32xf32, #tpu.memory_space<vmem>>, vector<1x32xf32>
    tpu.vector_store %arg10[%c40, %c0_52], %55 {strides = array<i32>} : memref<64x32xf32, #tpu.memory_space<vmem>>, vector<1x32xf32>,
    %c1_53 = arith.constant 1 : index
    %c5_54 = arith.constant 5 : index
    %57 = memref.load %arg0[%c1_53, %c5_54] : memref<2x8xi32, #tpu.memory_space<smem>>
    %58 = arith.index_cast %57 : i32 to index
    %c0_55 = arith.constant 0 : index
    %c0_56 = arith.constant 0 : index
    %59 = vector.load %arg1[%58, %c0_55, %c0_56] : memref<50x1x32xf32, #tpu.memory_space<vmem>>, vector<1x1x32xf32>
    %60 = vector.shape_cast %59 : vector<1x1x32xf32> to vector<1x32xf32>
    %c41 = arith.constant 41 : index
    %c0_57 = arith.constant 0 : index
    %61 = vector.load %arg10[%c41, %c0_57] : memref<64x32xf32, #tpu.memory_space<vmem>>, vector<1x32xf32>
    tpu.vector_store %arg10[%c41, %c0_57], %60 {strides = array<i32>} : memref<64x32xf32, #tpu.memory_space<vmem>>, vector<1x32xf32>,
    %c0_58 = arith.constant 0 : index
    %c6 = arith.constant 6 : index
    %62 = memref.load %arg0[%c0_58, %c6] : memref<2x8xi32, #tpu.memory_space<smem>>
    %63 = arith.index_cast %62 : i32 to index
    %c0_59 = arith.constant 0 : index
    %c0_60 = arith.constant 0 : index
    %64 = vector.load %arg1[%63, %c0_59, %c0_60] : memref<50x1x32xf32, #tpu.memory_space<vmem>>, vector<1x1x32xf32>
    %65 = vector.shape_cast %64 : vector<1x1x32xf32> to vector<1x32xf32>
    %c48 = arith.constant 48 : index
    %c0_61 = arith.constant 0 : index
    %66 = vector.load %arg10[%c48, %c0_61] : memref<64x32xf32, #tpu.memory_space<vmem>>, vector<1x32xf32>
    tpu.vector_store %arg10[%c48, %c0_61], %65 {strides = array<i32>} : memref<64x32xf32, #tpu.memory_space<vmem>>, vector<1x32xf32>,
    %c1_62 = arith.constant 1 : index
    %c6_63 = arith.constant 6 : index
    %67 = memref.load %arg0[%c1_62, %c6_63] : memref<2x8xi32, #tpu.memory_space<smem>>
    %68 = arith.index_cast %67 : i32 to index
    %c0_64 = arith.constant 0 : index
    %c0_65 = arith.constant 0 : index
    %69 = vector.load %arg1[%68, %c0_64, %c0_65] : memref<50x1x32xf32, #tpu.memory_space<vmem>>, vector<1x1x32xf32>
    %70 = vector.shape_cast %69 : vector<1x1x32xf32> to vector<1x32xf32>
    %c49 = arith.constant 49 : index
    %c0_66 = arith.constant 0 : index
    %71 = vector.load %arg10[%c49, %c0_66] : memref<64x32xf32, #tpu.memory_space<vmem>>, vector<1x32xf32>
    tpu.vector_store %arg10[%c49, %c0_66], %70 {strides = array<i32>} : memref<64x32xf32, #tpu.memory_space<vmem>>, vector<1x32xf32>,
    %c0_67 = arith.constant 0 : index
    %c7 = arith.constant 7 : index
    %72 = memref.load %arg0[%c0_67, %c7] : memref<2x8xi32, #tpu.memory_space<smem>>
    %73 = arith.index_cast %72 : i32 to index
    %c0_68 = arith.constant 0 : index
    %c0_69 = arith.constant 0 : index
    %74 = vector.load %arg1[%73, %c0_68, %c0_69] : memref<50x1x32xf32, #tpu.memory_space<vmem>>, vector<1x1x32xf32>
    %75 = vector.shape_cast %74 : vector<1x1x32xf32> to vector<1x32xf32>
    %c56 = arith.constant 56 : index
    %c0_70 = arith.constant 0 : index
    %76 = vector.load %arg10[%c56, %c0_70] : memref<64x32xf32, #tpu.memory_space<vmem>>, vector<1x32xf32>
    tpu.vector_store %arg10[%c56, %c0_70], %75 {strides = array<i32>} : memref<64x32xf32, #tpu.memory_space<vmem>>, vector<1x32xf32>,
    %c1_71 = arith.constant 1 : index
    %c7_72 = arith.constant 7 : index
    %77 = memref.load %arg0[%c1_71, %c7_72] : memref<2x8xi32, #tpu.memory_space<smem>>
    %78 = arith.index_cast %77 : i32 to index
    %c0_73 = arith.constant 0 : index
    %c0_74 = arith.constant 0 : index
    %79 = vector.load %arg1[%78, %c0_73, %c0_74] : memref<50x1x32xf32, #tpu.memory_space<vmem>>, vector<1x1x32xf32>
    %80 = vector.shape_cast %79 : vector<1x1x32xf32> to vector<1x32xf32>
    %c57 = arith.constant 57 : index
    %c0_75 = arith.constant 0 : index
    %81 = vector.load %arg10[%c57, %c0_75] : memref<64x32xf32, #tpu.memory_space<vmem>>, vector<1x32xf32>
    tpu.vector_store %arg10[%c57, %c0_75], %80 {strides = array<i32>} : memref<64x32xf32, #tpu.memory_space<vmem>>, vector<1x32xf32>,
    %c0_76 = arith.constant 0 : index
    %c0_77 = arith.constant 0 : index
    %82 = vector.load %arg10[%c0_76, %c0_77] : memref<64x32xf32, #tpu.memory_space<vmem>>, vector<64x32xf32>
    %c0_78 = arith.constant 0 : index
    %c0_79 = arith.constant 0 : index
    %83 = vector.load %arg2[%c0_78, %c0_79] : memref<32x512xf32, #tpu.memory_space<vmem>>, vector<32x512xf32>
    %cst_80 = arith.constant dense<0.000000e+00> : vector<64x512xf32>
    %84 = tpu.matmul %82, %83, %cst_80 {dimension_numbers = #tpu.dot_dimension_numbers<[1], [0], [0], [1], [0, 0, 1, 1], [], []>} : vector<64x32xf32>, vector<32x512xf32>, vector<64x512xf32> -> vector<64x512xf32>
    %c0_81 = arith.constant 0 : index
    %c0_82 = arith.constant 0 : index
    %85 = vector.load %arg4[%c0_81, %c0_82] : memref<1x512xf32, #tpu.memory_space<vmem>>, vector<1x512xf32>
    %86 = vector.broadcast %85 : vector<1x512xf32> to vector<64x512xf32>
    %87 = arith.addf %84, %86 : vector<64x512xf32>
    %c0_83 = arith.constant 0 : index
    %c0_84 = arith.constant 0 : index
    %88 = vector.load %arg11[%c0_83, %c0_84] : memref<64x512xf32, #tpu.memory_space<vmem>>, vector<64x512xf32>
    tpu.vector_store %arg11[%c0_83, %c0_84], %87 {strides = array<i32>} : memref<64x512xf32, #tpu.memory_space<vmem>>, vector<64x512xf32>,
    %89 = tpu.iota {dimensions = array<i32: 1>} : vector<8x512xi32>
    %c256_i32 = arith.constant 256 : i32
    %90 = vector.broadcast %c256_i32 : i32 to vector<8x512xi32>
    %91 = arith.cmpi sge, %89, %90 : vector<8x512xi32>
    %c384_i32 = arith.constant 384 : i32
    %92 = vector.broadcast %c384_i32 : i32 to vector<8x512xi32>
    %93 = arith.cmpi slt, %89, %92 : vector<8x512xi32>
    %94 = arith.andi %91, %93 : vector<8x512xi1>
    %c127_i32 = arith.constant 127 : i32
    %95 = vector.broadcast %c127_i32 : i32 to vector<8x512xi32>
    %96 = arith.andi %89, %95 : vector<8x512xi32>
    %c64_i32 = arith.constant 64 : i32
    %97 = vector.broadcast %c64_i32 : i32 to vector<8x512xi32>
    %98 = arith.cmpi slt, %96, %97 : vector<8x512xi32>
    %cst_85 = arith.constant 0.000000e+00 : f32
    %99 = vector.broadcast %cst_85 : f32 to vector<8x128xf32>
    %cst_86 = arith.constant 0.000000e+00 : f32
    %100 = vector.broadcast %cst_86 : f32 to vector<8x128xf32>
    %cst_87 = arith.constant 0.000000e+00 : f32
    %101 = vector.broadcast %cst_87 : f32 to vector<8x128xf32>
    %cst_88 = arith.constant 0xFF800000 : f32
    %102 = vector.broadcast %cst_88 : f32 to vector<8x128xf32>
    %c0_89 = arith.constant 0 : index
    %c0_90 = arith.constant 0 : index
    %103 = vector.load %arg11[%c0_89, %c0_90] : memref<64x512xf32, #tpu.memory_space<vmem>>, vector<8x512xf32>
    %c56_91 = arith.constant 56 : index
    %c0_92 = arith.constant 0 : index
    %104 = vector.load %arg11[%c56_91, %c0_92] : memref<64x512xf32, #tpu.memory_space<vmem>>, vector<8x512xf32>
    %105 = arith.select %98, %103, %104 : vector<8x512xi1>, vector<8x512xf32>
    %c0_93 = arith.constant 0 : index
    %c0_94 = arith.constant 0 : index
    %106 = vector.load %arg3[%c0_93, %c0_94] : memref<128x512xf32, #tpu.memory_space<vmem>>, vector<128x512xf32>
    %cst_95 = arith.constant dense<0.000000e+00> : vector<8x512xf32>
    %107 = tpu.matmul %99, %106, %cst_95 {dimension_numbers = #tpu.dot_dimension_numbers<[1], [0], [0], [1], [0, 0, 1, 1], [], []>} : vector<8x128xf32>, vector<128x512xf32>, vector<8x512xf32> -> vector<8x512xf32>
    %108 = arith.addf %105, %107 : vector<8x512xf32>
    %109 = arith.negf %108 : vector<8x512xf32>
    %110 = math.exp %109 : vector<8x512xf32>
    %cst_96 = arith.constant 1.000000e+00 : f32
    %111 = vector.broadcast %cst_96 : f32 to vector<8x512xf32>
    %112 = arith.addf %111, %110 : vector<8x512xf32>
    %113 = arith.divf %111, %112 : vector<8x512xf32>
    %cst_97 = arith.constant 2.000000e+00 : f32
    %114 = vector.broadcast %cst_97 : f32 to vector<8x512xf32>
    %115 = arith.mulf %114, %113 : vector<8x512xf32>
    %cst_98 = arith.constant 1.000000e+00 : f32
    %116 = vector.broadcast %cst_98 : f32 to vector<8x512xf32>
    %117 = arith.subf %115, %116 : vector<8x512xf32>
    %118 = arith.select %94, %117, %113 : vector<8x512xi1>, vector<8x512xf32>
    %119 = vector.extract_strided_slice %118 {offsets = [0, 0], sizes = [8, 128], strides = [1, 1]} : vector<8x512xf32> to vector<8x128xf32>
    %120 = vector.extract_strided_slice %118 {offsets = [0, 128], sizes = [8, 128], strides = [1, 1]} : vector<8x512xf32> to vector<8x128xf32>
    %121 = vector.extract_strided_slice %118 {offsets = [0, 256], sizes = [8, 128], strides = [1, 1]} : vector<8x512xf32> to vector<8x128xf32>
    %122 = vector.extract_strided_slice %118 {offsets = [0, 384], sizes = [8, 128], strides = [1, 1]} : vector<8x512xf32> to vector<8x128xf32>
    %123 = arith.mulf %120, %100 : vector<8x128xf32>
    %124 = arith.mulf %119, %121 : vector<8x128xf32>
    %125 = arith.addf %123, %124 : vector<8x128xf32>
    %126 = math.tanh %125 : vector<8x128xf32>
    %127 = arith.mulf %122, %126 : vector<8x128xf32>
    %128 = arith.addf %101, %127 : vector<8x128xf32>
    %129 = arith.maximumf %102, %127 : vector<8x128xf32>
    %c8_99 = arith.constant 8 : index
    %c0_100 = arith.constant 0 : index
    %130 = vector.load %arg11[%c8_99, %c0_100] : memref<64x512xf32, #tpu.memory_space<vmem>>, vector<8x512xf32>
    %c48_101 = arith.constant 48 : index
    %c0_102 = arith.constant 0 : index
    %131 = vector.load %arg11[%c48_101, %c0_102] : memref<64x512xf32, #tpu.memory_space<vmem>>, vector<8x512xf32>
    %132 = arith.select %98, %130, %131 : vector<8x512xi1>, vector<8x512xf32>
    %c0_103 = arith.constant 0 : index
    %c0_104 = arith.constant 0 : index
    %133 = vector.load %arg3[%c0_103, %c0_104] : memref<128x512xf32, #tpu.memory_space<vmem>>, vector<128x512xf32>
    %cst_105 = arith.constant dense<0.000000e+00> : vector<8x512xf32>
    %134 = tpu.matmul %127, %133, %cst_105 {dimension_numbers = #tpu.dot_dimension_numbers<[1], [0], [0], [1], [0, 0, 1, 1], [], []>} : vector<8x128xf32>, vector<128x512xf32>, vector<8x512xf32> -> vector<8x512xf32>
    %135 = arith.addf %132, %134 : vector<8x512xf32>
    %136 = arith.negf %135 : vector<8x512xf32>
    %137 = math.exp %136 : vector<8x512xf32>
    %cst_106 = arith.constant 1.000000e+00 : f32
    %138 = vector.broadcast %cst_106 : f32 to vector<8x512xf32>
    %139 = arith.addf %138, %137 : vector<8x512xf32>
    %140 = arith.divf %138, %139 : vector<8x512xf32>
    %cst_107 = arith.constant 2.000000e+00 : f32
    %141 = vector.broadcast %cst_107 : f32 to vector<8x512xf32>
    %142 = arith.mulf %141, %140 : vector<8x512xf32>
    %cst_108 = arith.constant 1.000000e+00 : f32
    %143 = vector.broadcast %cst_108 : f32 to vector<8x512xf32>
    %144 = arith.subf %142, %143 : vector<8x512xf32>
    %145 = arith.select %94, %144, %140 : vector<8x512xi1>, vector<8x512xf32>
    %146 = vector.extract_strided_slice %145 {offsets = [0, 0], sizes = [8, 128], strides = [1, 1]} : vector<8x512xf32> to vector<8x128xf32>
    %147 = vector.extract_strided_slice %145 {offsets = [0, 128], sizes = [8, 128], strides = [1, 1]} : vector<8x512xf32> to vector<8x128xf32>
    %148 = vector.extract_strided_slice %145 {offsets = [0, 256], sizes = [8, 128], strides = [1, 1]} : vector<8x512xf32> to vector<8x128xf32>
    %149 = vector.extract_strided_slice %145 {offsets = [0, 384], sizes = [8, 128], strides = [1, 1]} : vector<8x512xf32> to vector<8x128xf32>
    %150 = arith.mulf %147, %125 : vector<8x128xf32>
    %151 = arith.mulf %146, %148 : vector<8x128xf32>
    %152 = arith.addf %150, %151 : vector<8x128xf32>
    %153 = math.tanh %152 : vector<8x128xf32>
    %154 = arith.mulf %149, %153 : vector<8x128xf32>
    %155 = arith.addf %128, %154 : vector<8x128xf32>
    %156 = arith.maximumf %129, %154 : vector<8x128xf32>
    %c16_109 = arith.constant 16 : index
    %c0_110 = arith.constant 0 : index
    %157 = vector.load %arg11[%c16_109, %c0_110] : memref<64x512xf32, #tpu.memory_space<vmem>>, vector<8x512xf32>
    %c40_111 = arith.constant 40 : index
    %c0_112 = arith.constant 0 : index
    %158 = vector.load %arg11[%c40_111, %c0_112] : memref<64x512xf32, #tpu.memory_space<vmem>>, vector<8x512xf32>
    %159 = arith.select %98, %157, %158 : vector<8x512xi1>, vector<8x512xf32>
    %c0_113 = arith.constant 0 : index
    %c0_114 = arith.constant 0 : index
    %160 = vector.load %arg3[%c0_113, %c0_114] : memref<128x512xf32, #tpu.memory_space<vmem>>, vector<128x512xf32>
    %cst_115 = arith.constant dense<0.000000e+00> : vector<8x512xf32>
    %161 = tpu.matmul %154, %160, %cst_115 {dimension_numbers = #tpu.dot_dimension_numbers<[1], [0], [0], [1], [0, 0, 1, 1], [], []>} : vector<8x128xf32>, vector<128x512xf32>, vector<8x512xf32> -> vector<8x512xf32>
    %162 = arith.addf %159, %161 : vector<8x512xf32>
    %163 = arith.negf %162 : vector<8x512xf32>
    %164 = math.exp %163 : vector<8x512xf32>
    %cst_116 = arith.constant 1.000000e+00 : f32
    %165 = vector.broadcast %cst_116 : f32 to vector<8x512xf32>
    %166 = arith.addf %165, %164 : vector<8x512xf32>
    %167 = arith.divf %165, %166 : vector<8x512xf32>
    %cst_117 = arith.constant 2.000000e+00 : f32
    %168 = vector.broadcast %cst_117 : f32 to vector<8x512xf32>
    %169 = arith.mulf %168, %167 : vector<8x512xf32>
    %cst_118 = arith.constant 1.000000e+00 : f32
    %170 = vector.broadcast %cst_118 : f32 to vector<8x512xf32>
    %171 = arith.subf %169, %170 : vector<8x512xf32>
    %172 = arith.select %94, %171, %167 : vector<8x512xi1>, vector<8x512xf32>
    %173 = vector.extract_strided_slice %172 {offsets = [0, 0], sizes = [8, 128], strides = [1, 1]} : vector<8x512xf32> to vector<8x128xf32>
    %174 = vector.extract_strided_slice %172 {offsets = [0, 128], sizes = [8, 128], strides = [1, 1]} : vector<8x512xf32> to vector<8x128xf32>
    %175 = vector.extract_strided_slice %172 {offsets = [0, 256], sizes = [8, 128], strides = [1, 1]} : vector<8x512xf32> to vector<8x128xf32>
    %176 = vector.extract_strided_slice %172 {offsets = [0, 384], sizes = [8, 128], strides = [1, 1]} : vector<8x512xf32> to vector<8x128xf32>
    %177 = arith.mulf %174, %152 : vector<8x128xf32>
    %178 = arith.mulf %173, %175 : vector<8x128xf32>
    %179 = arith.addf %177, %178 : vector<8x128xf32>
    %180 = math.tanh %179 : vector<8x128xf32>
    %181 = arith.mulf %176, %180 : vector<8x128xf32>
    %182 = arith.addf %155, %181 : vector<8x128xf32>
    %183 = arith.maximumf %156, %181 : vector<8x128xf32>
    %c24_119 = arith.constant 24 : index
    %c0_120 = arith.constant 0 : index
    %184 = vector.load %arg11[%c24_119, %c0_120] : memref<64x512xf32, #tpu.memory_space<vmem>>, vector<8x512xf32>
    %c32_121 = arith.constant 32 : index
    %c0_122 = arith.constant 0 : index
    %185 = vector.load %arg11[%c32_121, %c0_122] : memref<64x512xf32, #tpu.memory_space<vmem>>, vector<8x512xf32>
    %186 = arith.select %98, %184, %185 : vector<8x512xi1>, vector<8x512xf32>
    %c0_123 = arith.constant 0 : index
    %c0_124 = arith.constant 0 : index
    %187 = vector.load %arg3[%c0_123, %c0_124] : memref<128x512xf32, #tpu.memory_space<vmem>>, vector<128x512xf32>
    %cst_125 = arith.constant dense<0.000000e+00> : vector<8x512xf32>
    %188 = tpu.matmul %181, %187, %cst_125 {dimension_numbers = #tpu.dot_dimension_numbers<[1], [0], [0], [1], [0, 0, 1, 1], [], []>} : vector<8x128xf32>, vector<128x512xf32>, vector<8x512xf32> -> vector<8x512xf32>
    %189 = arith.addf %186, %188 : vector<8x512xf32>
    %190 = arith.negf %189 : vector<8x512xf32>
    %191 = math.exp %190 : vector<8x512xf32>
    %cst_126 = arith.constant 1.000000e+00 : f32
    %192 = vector.broadcast %cst_126 : f32 to vector<8x512xf32>
    %193 = arith.addf %192, %191 : vector<8x512xf32>
    %194 = arith.divf %192, %193 : vector<8x512xf32>
    %cst_127 = arith.constant 2.000000e+00 : f32
    %195 = vector.broadcast %cst_127 : f32 to vector<8x512xf32>
    %196 = arith.mulf %195, %194 : vector<8x512xf32>
    %cst_128 = arith.constant 1.000000e+00 : f32
    %197 = vector.broadcast %cst_128 : f32 to vector<8x512xf32>
    %198 = arith.subf %196, %197 : vector<8x512xf32>
    %199 = arith.select %94, %198, %194 : vector<8x512xi1>, vector<8x512xf32>
    %200 = vector.extract_strided_slice %199 {offsets = [0, 0], sizes = [8, 128], strides = [1, 1]} : vector<8x512xf32> to vector<8x128xf32>
    %201 = vector.extract_strided_slice %199 {offsets = [0, 128], sizes = [8, 128], strides = [1, 1]} : vector<8x512xf32> to vector<8x128xf32>
    %202 = vector.extract_strided_slice %199 {offsets = [0, 256], sizes = [8, 128], strides = [1, 1]} : vector<8x512xf32> to vector<8x128xf32>
    %203 = vector.extract_strided_slice %199 {offsets = [0, 384], sizes = [8, 128], strides = [1, 1]} : vector<8x512xf32> to vector<8x128xf32>
    %204 = arith.mulf %201, %179 : vector<8x128xf32>
    %205 = arith.mulf %200, %202 : vector<8x128xf32>
    %206 = arith.addf %204, %205 : vector<8x128xf32>
    %207 = math.tanh %206 : vector<8x128xf32>
    %208 = arith.mulf %203, %207 : vector<8x128xf32>
    %209 = arith.addf %182, %208 : vector<8x128xf32>
    %210 = arith.maximumf %183, %208 : vector<8x128xf32>
    %c32_129 = arith.constant 32 : index
    %c0_130 = arith.constant 0 : index
    %211 = vector.load %arg11[%c32_129, %c0_130] : memref<64x512xf32, #tpu.memory_space<vmem>>, vector<8x512xf32>
    %c24_131 = arith.constant 24 : index
    %c0_132 = arith.constant 0 : index
    %212 = vector.load %arg11[%c24_131, %c0_132] : memref<64x512xf32, #tpu.memory_space<vmem>>, vector<8x512xf32>
    %213 = arith.select %98, %211, %212 : vector<8x512xi1>, vector<8x512xf32>
    %c0_133 = arith.constant 0 : index
    %c0_134 = arith.constant 0 : index
    %214 = vector.load %arg3[%c0_133, %c0_134] : memref<128x512xf32, #tpu.memory_space<vmem>>, vector<128x512xf32>
    %cst_135 = arith.constant dense<0.000000e+00> : vector<8x512xf32>
    %215 = tpu.matmul %208, %214, %cst_135 {dimension_numbers = #tpu.dot_dimension_numbers<[1], [0], [0], [1], [0, 0, 1, 1], [], []>} : vector<8x128xf32>, vector<128x512xf32>, vector<8x512xf32> -> vector<8x512xf32>
    %216 = arith.addf %213, %215 : vector<8x512xf32>
    %217 = arith.negf %216 : vector<8x512xf32>
    %218 = math.exp %217 : vector<8x512xf32>
    %cst_136 = arith.constant 1.000000e+00 : f32
    %219 = vector.broadcast %cst_136 : f32 to vector<8x512xf32>
    %220 = arith.addf %219, %218 : vector<8x512xf32>
    %221 = arith.divf %219, %220 : vector<8x512xf32>
    %cst_137 = arith.constant 2.000000e+00 : f32
    %222 = vector.broadcast %cst_137 : f32 to vector<8x512xf32>
    %223 = arith.mulf %222, %221 : vector<8x512xf32>
    %cst_138 = arith.constant 1.000000e+00 : f32
    %224 = vector.broadcast %cst_138 : f32 to vector<8x512xf32>
    %225 = arith.subf %223, %224 : vector<8x512xf32>
    %226 = arith.select %94, %225, %221 : vector<8x512xi1>, vector<8x512xf32>
    %227 = vector.extract_strided_slice %226 {offsets = [0, 0], sizes = [8, 128], strides = [1, 1]} : vector<8x512xf32> to vector<8x128xf32>
    %228 = vector.extract_strided_slice %226 {offsets = [0, 128], sizes = [8, 128], strides = [1, 1]} : vector<8x512xf32> to vector<8x128xf32>
    %229 = vector.extract_strided_slice %226 {offsets = [0, 256], sizes = [8, 128], strides = [1, 1]} : vector<8x512xf32> to vector<8x128xf32>
    %230 = vector.extract_strided_slice %226 {offsets = [0, 384], sizes = [8, 128], strides = [1, 1]} : vector<8x512xf32> to vector<8x128xf32>
    %231 = arith.mulf %228, %206 : vector<8x128xf32>
    %232 = arith.mulf %227, %229 : vector<8x128xf32>
    %233 = arith.addf %231, %232 : vector<8x128xf32>
    %234 = math.tanh %233 : vector<8x128xf32>
    %235 = arith.mulf %230, %234 : vector<8x128xf32>
    %236 = arith.addf %209, %235 : vector<8x128xf32>
    %237 = arith.maximumf %210, %235 : vector<8x128xf32>
    %c40_139 = arith.constant 40 : index
    %c0_140 = arith.constant 0 : index
    %238 = vector.load %arg11[%c40_139, %c0_140] : memref<64x512xf32, #tpu.memory_space<vmem>>, vector<8x512xf32>
    %c16_141 = arith.constant 16 : index
    %c0_142 = arith.constant 0 : index
    %239 = vector.load %arg11[%c16_141, %c0_142] : memref<64x512xf32, #tpu.memory_space<vmem>>, vector<8x512xf32>
    %240 = arith.select %98, %238, %239 : vector<8x512xi1>, vector<8x512xf32>
    %c0_143 = arith.constant 0 : index
    %c0_144 = arith.constant 0 : index
    %241 = vector.load %arg3[%c0_143, %c0_144] : memref<128x512xf32, #tpu.memory_space<vmem>>, vector<128x512xf32>
    %cst_145 = arith.constant dense<0.000000e+00> : vector<8x512xf32>
    %242 = tpu.matmul %235, %241, %cst_145 {dimension_numbers = #tpu.dot_dimension_numbers<[1], [0], [0], [1], [0, 0, 1, 1], [], []>} : vector<8x128xf32>, vector<128x512xf32>, vector<8x512xf32> -> vector<8x512xf32>
    %243 = arith.addf %240, %242 : vector<8x512xf32>
    %244 = arith.negf %243 : vector<8x512xf32>
    %245 = math.exp %244 : vector<8x512xf32>
    %cst_146 = arith.constant 1.000000e+00 : f32
    %246 = vector.broadcast %cst_146 : f32 to vector<8x512xf32>
    %247 = arith.addf %246, %245 : vector<8x512xf32>
    %248 = arith.divf %246, %247 : vector<8x512xf32>
    %cst_147 = arith.constant 2.000000e+00 : f32
    %249 = vector.broadcast %cst_147 : f32 to vector<8x512xf32>
    %250 = arith.mulf %249, %248 : vector<8x512xf32>
    %cst_148 = arith.constant 1.000000e+00 : f32
    %251 = vector.broadcast %cst_148 : f32 to vector<8x512xf32>
    %252 = arith.subf %250, %251 : vector<8x512xf32>
    %253 = arith.select %94, %252, %248 : vector<8x512xi1>, vector<8x512xf32>
    %254 = vector.extract_strided_slice %253 {offsets = [0, 0], sizes = [8, 128], strides = [1, 1]} : vector<8x512xf32> to vector<8x128xf32>
    %255 = vector.extract_strided_slice %253 {offsets = [0, 128], sizes = [8, 128], strides = [1, 1]} : vector<8x512xf32> to vector<8x128xf32>
    %256 = vector.extract_strided_slice %253 {offsets = [0, 256], sizes = [8, 128], strides = [1, 1]} : vector<8x512xf32> to vector<8x128xf32>
    %257 = vector.extract_strided_slice %253 {offsets = [0, 384], sizes = [8, 128], strides = [1, 1]} : vector<8x512xf32> to vector<8x128xf32>
    %258 = arith.mulf %255, %233 : vector<8x128xf32>
    %259 = arith.mulf %254, %256 : vector<8x128xf32>
    %260 = arith.addf %258, %259 : vector<8x128xf32>
    %261 = math.tanh %260 : vector<8x128xf32>
    %262 = arith.mulf %257, %261 : vector<8x128xf32>
    %263 = arith.addf %236, %262 : vector<8x128xf32>
    %264 = arith.maximumf %237, %262 : vector<8x128xf32>
    %c48_149 = arith.constant 48 : index
    %c0_150 = arith.constant 0 : index
    %265 = vector.load %arg11[%c48_149, %c0_150] : memref<64x512xf32, #tpu.memory_space<vmem>>, vector<8x512xf32>
    %c8_151 = arith.constant 8 : index
    %c0_152 = arith.constant 0 : index
    %266 = vector.load %arg11[%c8_151, %c0_152] : memref<64x512xf32, #tpu.memory_space<vmem>>, vector<8x512xf32>
    %267 = arith.select %98, %265, %266 : vector<8x512xi1>, vector<8x512xf32>
    %c0_153 = arith.constant 0 : index
    %c0_154 = arith.constant 0 : index
    %268 = vector.load %arg3[%c0_153, %c0_154] : memref<128x512xf32, #tpu.memory_space<vmem>>, vector<128x512xf32>
    %cst_155 = arith.constant dense<0.000000e+00> : vector<8x512xf32>
    %269 = tpu.matmul %262, %268, %cst_155 {dimension_numbers = #tpu.dot_dimension_numbers<[1], [0], [0], [1], [0, 0, 1, 1], [], []>} : vector<8x128xf32>, vector<128x512xf32>, vector<8x512xf32> -> vector<8x512xf32>
    %270 = arith.addf %267, %269 : vector<8x512xf32>
    %271 = arith.negf %270 : vector<8x512xf32>
    %272 = math.exp %271 : vector<8x512xf32>
    %cst_156 = arith.constant 1.000000e+00 : f32
    %273 = vector.broadcast %cst_156 : f32 to vector<8x512xf32>
    %274 = arith.addf %273, %272 : vector<8x512xf32>
    %275 = arith.divf %273, %274 : vector<8x512xf32>
    %cst_157 = arith.constant 2.000000e+00 : f32
    %276 = vector.broadcast %cst_157 : f32 to vector<8x512xf32>
    %277 = arith.mulf %276, %275 : vector<8x512xf32>
    %cst_158 = arith.constant 1.000000e+00 : f32
    %278 = vector.broadcast %cst_158 : f32 to vector<8x512xf32>
    %279 = arith.subf %277, %278 : vector<8x512xf32>
    %280 = arith.select %94, %279, %275 : vector<8x512xi1>, vector<8x512xf32>
    %281 = vector.extract_strided_slice %280 {offsets = [0, 0], sizes = [8, 128], strides = [1, 1]} : vector<8x512xf32> to vector<8x128xf32>
    %282 = vector.extract_strided_slice %280 {offsets = [0, 128], sizes = [8, 128], strides = [1, 1]} : vector<8x512xf32> to vector<8x128xf32>
    %283 = vector.extract_strided_slice %280 {offsets = [0, 256], sizes = [8, 128], strides = [1, 1]} : vector<8x512xf32> to vector<8x128xf32>
    %284 = vector.extract_strided_slice %280 {offsets = [0, 384], sizes = [8, 128], strides = [1, 1]} : vector<8x512xf32> to vector<8x128xf32>
    %285 = arith.mulf %282, %260 : vector<8x128xf32>
    %286 = arith.mulf %281, %283 : vector<8x128xf32>
    %287 = arith.addf %285, %286 : vector<8x128xf32>
    %288 = math.tanh %287 : vector<8x128xf32>
    %289 = arith.mulf %284, %288 : vector<8x128xf32>
    %290 = arith.addf %263, %289 : vector<8x128xf32>
    %291 = arith.maximumf %264, %289 : vector<8x128xf32>
    %c56_159 = arith.constant 56 : index
    %c0_160 = arith.constant 0 : index
    %292 = vector.load %arg11[%c56_159, %c0_160] : memref<64x512xf32, #tpu.memory_space<vmem>>, vector<8x512xf32>
    %c0_161 = arith.constant 0 : index
    %c0_162 = arith.constant 0 : index
    %293 = vector.load %arg11[%c0_161, %c0_162] : memref<64x512xf32, #tpu.memory_space<vmem>>, vector<8x512xf32>
    %294 = arith.select %98, %292, %293 : vector<8x512xi1>, vector<8x512xf32>
    %c0_163 = arith.constant 0 : index
    %c0_164 = arith.constant 0 : index
    %295 = vector.load %arg3[%c0_163, %c0_164] : memref<128x512xf32, #tpu.memory_space<vmem>>, vector<128x512xf32>
    %cst_165 = arith.constant dense<0.000000e+00> : vector<8x512xf32>
    %296 = tpu.matmul %289, %295, %cst_165 {dimension_numbers = #tpu.dot_dimension_numbers<[1], [0], [0], [1], [0, 0, 1, 1], [], []>} : vector<8x128xf32>, vector<128x512xf32>, vector<8x512xf32> -> vector<8x512xf32>
    %297 = arith.addf %294, %296 : vector<8x512xf32>
    %298 = arith.negf %297 : vector<8x512xf32>
    %299 = math.exp %298 : vector<8x512xf32>
    %cst_166 = arith.constant 1.000000e+00 : f32
    %300 = vector.broadcast %cst_166 : f32 to vector<8x512xf32>
    %301 = arith.addf %300, %299 : vector<8x512xf32>
    %302 = arith.divf %300, %301 : vector<8x512xf32>
    %cst_167 = arith.constant 2.000000e+00 : f32
    %303 = vector.broadcast %cst_167 : f32 to vector<8x512xf32>
    %304 = arith.mulf %303, %302 : vector<8x512xf32>
    %cst_168 = arith.constant 1.000000e+00 : f32
    %305 = vector.broadcast %cst_168 : f32 to vector<8x512xf32>
    %306 = arith.subf %304, %305 : vector<8x512xf32>
    %307 = arith.select %94, %306, %302 : vector<8x512xi1>, vector<8x512xf32>
    %308 = vector.extract_strided_slice %307 {offsets = [0, 0], sizes = [8, 128], strides = [1, 1]} : vector<8x512xf32> to vector<8x128xf32>
    %309 = vector.extract_strided_slice %307 {offsets = [0, 128], sizes = [8, 128], strides = [1, 1]} : vector<8x512xf32> to vector<8x128xf32>
    %310 = vector.extract_strided_slice %307 {offsets = [0, 256], sizes = [8, 128], strides = [1, 1]} : vector<8x512xf32> to vector<8x128xf32>
    %311 = vector.extract_strided_slice %307 {offsets = [0, 384], sizes = [8, 128], strides = [1, 1]} : vector<8x512xf32> to vector<8x128xf32>
    %312 = arith.mulf %309, %287 : vector<8x128xf32>
    %313 = arith.mulf %308, %310 : vector<8x128xf32>
    %314 = arith.addf %312, %313 : vector<8x128xf32>
    %315 = math.tanh %314 : vector<8x128xf32>
    %316 = arith.mulf %311, %315 : vector<8x128xf32>
    %317 = arith.addf %290, %316 : vector<8x128xf32>
    %318 = arith.maximumf %291, %316 : vector<8x128xf32>
    %cst_169 = arith.constant 1.250000e-01 : f32
    %319 = vector.broadcast %cst_169 : f32 to vector<8x128xf32>
    %320 = arith.mulf %317, %319 : vector<8x128xf32>
    %321 = tpu.concatenate %320, %318 in 1 : vector<8x128xf32>, vector<8x128xf32> -> vector<8x256xf32>
    %c0_170 = arith.constant 0 : index
    %c0_171 = arith.constant 0 : index
    %322 = vector.load %arg5[%c0_170, %c0_171] : memref<256x128xf32, #tpu.memory_space<vmem>>, vector<256x128xf32>
    %cst_172 = arith.constant dense<0.000000e+00> : vector<8x128xf32>
    %323 = tpu.matmul %321, %322, %cst_172 {dimension_numbers = #tpu.dot_dimension_numbers<[1], [0], [0], [1], [0, 0, 1, 1], [], []>} : vector<8x256xf32>, vector<256x128xf32>, vector<8x128xf32> -> vector<8x128xf32>
    %c0_173 = arith.constant 0 : index
    %c0_174 = arith.constant 0 : index
    %324 = vector.load %arg6[%c0_173, %c0_174] : memref<1x128xf32, #tpu.memory_space<vmem>>, vector<1x128xf32>
    %325 = vector.broadcast %324 : vector<1x128xf32> to vector<8x128xf32>
    %326 = arith.addf %323, %325 : vector<8x128xf32>
    %cst_175 = arith.constant 0.000000e+00 : f32
    %327 = vector.broadcast %cst_175 : f32 to vector<8x128xf32>
    %328 = arith.maximumf %326, %327 : vector<8x128xf32>
    %c0_176 = arith.constant 0 : index
    %c0_177 = arith.constant 0 : index
    %329 = vector.load %arg7[%c0_176, %c0_177] : memref<128x128xf32, #tpu.memory_space<vmem>>, vector<128x128xf32>
    %cst_178 = arith.constant dense<0.000000e+00> : vector<8x128xf32>
    %330 = tpu.matmul %328, %329, %cst_178 {dimension_numbers = #tpu.dot_dimension_numbers<[1], [0], [0], [1], [0, 0, 1, 1], [], []>} : vector<8x128xf32>, vector<128x128xf32>, vector<8x128xf32> -> vector<8x128xf32>
    %c0_179 = arith.constant 0 : index
    %c0_180 = arith.constant 0 : index
    %331 = vector.load %arg8[%c0_179, %c0_180] : memref<1x128xf32, #tpu.memory_space<vmem>>, vector<1x128xf32>
    %332 = vector.broadcast %331 : vector<1x128xf32> to vector<8x128xf32>
    %333 = arith.addf %330, %332 : vector<8x128xf32>
    %c0_181 = arith.constant 0 : index
    %c0_182 = arith.constant 0 : index
    %334 = vector.load %arg9[%c0_181, %c0_182] : memref<8x128xf32, #tpu.memory_space<vmem>>, vector<8x128xf32>
    tpu.vector_store %arg9[%c0_181, %c0_182], %333 {strides = array<i32>} : memref<8x128xf32, #tpu.memory_space<vmem>>, vector<8x128xf32>,
    return
  }
}

</mosaic_0001>

<bundles_post_ra>
// kernel: tpu_custom_call.1
= control target key start
LH: loop header
LB: loop body
LE: loop exit
PB: predicated region body
PF: predicated region fallthrough
CT: control target
= control target key end

     0   :  { %14 = vsyncpa [#allocation7], 0  ;;  %s4560_s0 = inlined_call_operand.vmem [shape: s32[2,8], index: 0, kind: input, shape index: {}]   ;;  %s4561_s1 = inlined_call_operand.vmem [shape: f32[50,1,32], index: 1, kind: input, shape index: {}]   ;;  %s4562_s2 = inlined_call_operand.hbm [shape: f32[32,512], index: 2, kind: input, shape index: {}]   ;;  %s4563_s3 = inlined_call_operand.hbm [shape: f32[128,512], index: 3, kind: input, shape index: {}]   ;;  %s4564_s4 = inlined_call_operand.vmem [shape: f32[1,512], index: 4, kind: input, shape index: {}]   ;;  %s4565_s5 = inlined_call_operand.hbm [shape: f32[256,128], index: 5, kind: input, shape index: {}]   ;;  %s4566_s6 = inlined_call_operand.vmem [shape: f32[1,128], index: 6, kind: input, shape index: {}]   ;;  %s4567_s7 = inlined_call_operand.hbm [shape: f32[128,128], index: 7, kind: input, shape index: {}]   ;;  %s4568_s8 = inlined_call_operand.vmem [shape: f32[1,128], index: 8, kind: input, shape index: {}]   ;;  %s4569_s9 = inlined_call_operand.hbm [shape: f32[8,128], index: 9, kind: output, shape index: {}]  }
   0x1   :  { %15 = vsyncpa [#allocation5], 0 }
   0x2   :  { %16 = vsyncpa [#allocation10], 0 }
   0x3   :  { %17 = vsyncpa [#allocation13], 0 }
   0x4   :  { %18 = vsyncpa [#allocation6], 0  ;;  %s25_s11 = sshll.u32 %s4560_s0, 4  ;;  %s3463_s12 = smov [#allocation9]   ;;  %s26_s11 = int_to_ptr.vmem [resolvable:$true] %s25_s11 }
   0x5   :  { %s48_s13 = sshll.u32 %s3463_s12, 4  ;;  %s3331_s16 = scalar_lea.hbm %s4563_s3, 8192  ;;  %s49_s13 = int_to_ptr.vmem [resolvable:$true] %s48_s13 }
   0x6   :  { %p3332_p0 = scmp.ne.s32.totalorder %s4563_s3, %s3331_s16  ;;  %p3335_p1 = scmp.lt.u32.totalorder %s3331_s16, %s4563_s3 }
   0x8   :  { %p3337_p2 = pnand %p3335_p1, %p3332_p0 }
   0xa   :  { %3340 = shalt.err (!%p3337_p2)
}
   0xb   :  { %s3341_s21 = scalar_lea.vmem %s49_s13, 8192  ;;  %p3346_p4 = scmp.lt.s32.totalorder %s49_s13, %s49_s13 }
   0xc   :  { %p3342_p3 = scmp.ne.s32.totalorder %s49_s13, %s3341_s21  ;;  %p3347_p5 = scmp.lt.s32.totalorder %s3341_s21, %s3341_s21 }
   0xe   :  { %p3348_p6 = por %p3347_p5, %p3346_p4 }
  0x10   :  { %p3349_p7 = pnand %p3348_p6, %p3342_p3 }
  0x12   :  { %3352 = shalt.err (!%p3349_p7)
}
  0x13   :  { %s3464_s0 = smov 512   ;;  %s3465_s22 = smov 32  }
  0x14   :  { %54 = dma.hbm_to_vmem [thread:$0]  %s4563_s3, 8192, %s49_s13, [#allocation10], %s3464_s0, %s3464_s0, %s3465_s22  }
  0x15   :  { %s3353_s25 = scalar_lea.vmem %s26_s11, 32  ;;  %p3358_p9 = scmp.lt.s32.totalorder %s26_s11, %s26_s11 }
  0x16   :  { %p3354_p8 = scmp.ne.s32.totalorder %s26_s11, %s3353_s25  ;;  %p3359_p10 = scmp.lt.s32.totalorder %s3353_s25, %s3353_s25 }
  0x18   :  { %p3360_p11 = por %p3359_p10, %p3358_p9 }
  0x1a   :  { %p3361_p12 = pnand %p3360_p11, %p3354_p8 }
  0x1c   :  { %3364 = shalt.err (!%p3361_p12)
}
  0x1d   :  { %s3466_s26 = smov [#allocation4]   ;;  %s3467_s27 = smov [#allocation8]  }
  0x1e   :  { %28 = dma.vmem_to_smem %s26_s11, 32, %s3466_s26, [#allocation7]  }
  0x1f   :  { %s36_s28 = sshll.u32 %s3467_s27, 4  ;;  %s3468_s29 = smov [#allocation11]   ;;  %s37_s28 = int_to_ptr.vmem [resolvable:$true] %s36_s28 }
  0x20   :  { %s62_s30 = sshll.u32 %s3468_s29, 4  ;;  %s3365_s3 = scalar_lea.hbm %s4562_s2, 2048  ;;  %s3544_s30 = int_to_ptr.vmem [resolvable:$true] %s62_s30 }
  0x21   :  { %p3366_p13 = scmp.ne.s32.totalorder %s4562_s2, %s3365_s3  ;;  %p3369_p0 = scmp.lt.u32.totalorder %s3365_s3, %s4562_s2 }
  0x23   :  { %p3371_p1 = pnand %p3369_p0, %p3366_p13 }
  0x25   :  { %3374 = shalt.err (!%p3371_p1)
}
  0x26   :  { %s3375_s11 = scalar_lea.vmem %s37_s28, 2048  ;;  %p3380_p3 = scmp.lt.s32.totalorder %s37_s28, %s37_s28 }
  0x27   :  { %p3376_p2 = scmp.ne.s32.totalorder %s37_s28, %s3375_s11  ;;  %p3381_p4 = scmp.lt.s32.totalorder %s3375_s11, %s3375_s11 }
  0x29   :  { %p3382_p5 = por %p3381_p4, %p3380_p3 }
  0x2b   :  { %p3383_p6 = pnand %p3382_p5, %p3376_p2 }
  0x2d   :  { %3386 = shalt.err (!%p3383_p6)
}
  0x2e   :  { %42 = dma.hbm_to_vmem [thread:$0]  %s4562_s2, 2048, %s37_s28, [#allocation5], %s3464_s0, %s3464_s0, %s3465_s22  }
  0x2f   :  { %s3387_s21 = scalar_lea.hbm %s4565_s5, 4096 }
  0x30   :  { %p3388_p7 = scmp.ne.s32.totalorder %s4565_s5, %s3387_s21  ;;  %p3391_p8 = scmp.lt.u32.totalorder %s3387_s21, %s4565_s5 }
  0x32   :  { %p3393_p9 = pnand %p3391_p8, %p3388_p7 }
  0x34   :  { %3396 = shalt.err (!%p3393_p9)
}
  0x35   :  { %s3397_s27 = scalar_lea.vmem %s3544_s30, 4096  ;;  %p3402_p11 = scmp.lt.s32.totalorder %s3544_s30, %s3544_s30 }
  0x36   :  { %p3398_p10 = scmp.ne.s32.totalorder %s3544_s30, %s3397_s27  ;;  %p3403_p12 = scmp.lt.s32.totalorder %s3397_s27, %s3397_s27 }
  0x38   :  { %p3404_p13 = por %p3403_p12, %p3402_p11 }
  0x3a   :  { %p3405_p0 = pnand %p3404_p13, %p3398_p10 }
  0x3c   :  { %3408 = shalt.err (!%p3405_p0)
}
  0x3d   :  { %s3469_s2 = smov 128   ;;  %s3470_s0 = smov 8  }
  0x3e   :  { %68 = dma.hbm_to_vmem [thread:$0]  %s4565_s5, 4096, %s3544_s30, [#allocation10], %s3469_s2, %s3469_s2, %s3470_s0  }
  0x3f   :  { %s3471_s29 = smov [#allocation12]   ;;  %s3409_s13 = scalar_lea.hbm %s4567_s7, 2048 }
  0x40   :  { %s76_s10 = sshll.u32 %s3471_s29, 4  ;;  %p3410_p1 = scmp.ne.s32.totalorder %s4567_s7, %s3409_s13  ;;  %s77_s10 = int_to_ptr.vmem [resolvable:$true] %s76_s10 }
  0x41   :  { %p3413_p2 = scmp.lt.u32.totalorder %s3409_s13, %s4567_s7 }
  0x43   :  { %p3415_p3 = pnand %p3413_p2, %p3410_p1 }
  0x45   :  { %3418 = shalt.err (!%p3415_p3)
}
  0x46   :  { %s3419_s17 = scalar_lea.vmem %s77_s10, 2048  ;;  %p3424_p5 = scmp.lt.s32.totalorder %s77_s10, %s77_s10 }
  0x47   :  { %p3420_p4 = scmp.ne.s32.totalorder %s77_s10, %s3419_s17  ;;  %p3425_p6 = scmp.lt.s32.totalorder %s3419_s17, %s3419_s17 }
  0x49   :  { %p3426_p7 = por %p3425_p6, %p3424_p5 }
  0x4b   :  { %p3427_p8 = pnand %p3426_p7, %p3420_p4 }
  0x4d   :  { %3430 = shalt.err (!%p3427_p8)
}
  0x4e   :  { %82 = dma.hbm_to_vmem [thread:$0]  %s4567_s7, 2048, %s77_s10, [#allocation13], %s3469_s2, %s3469_s2, %s3470_s0  }
  0x4f   :  { %3453 = dma.done.wait [#allocation7], 32  }
  0x50   :  { %3454 = vsyncadd [#allocation7], 4294967264 }
  0x51   :  { %3455 = dma.done.wait [#allocation5], 2048  }
  0x52   :  { %3456 = vsyncadd [#allocation5], 4294965248 }
  0x53   :  { %3457 = dma.done.wait [#allocation10], 12288  }
  0x54   :  { %3458 = vsyncadd [#allocation10], 4294955008 }
  0x55   :  { %3459 = dma.done.wait [#allocation13], 2048  }
  0x56   :  { %3460 = vsyncadd [#allocation13], 4294965248 }
  0x57   :  { %100 = sfence }
  0x58   :  { %v186_v0 = vld [vmem:[#allocation8 + $0x18] sm:$0xff]  ;;  %v184_v2 = vld [vmem:[#allocation8 + $0x8] sm:$0xff]  ;;  %vm101_vm0 = vcmask 261120   ;;  %v185_v5 = vld [vmem:[#allocation8 + $0x10] sm:$0xff]  ;;  %v4570_v7 = vmov 0.0   ;;  %s3594_s7 = sld [smem:[#allocation4]] }
  0x59   :  { %v190_v1 = vld [vmem:[#allocation8 + $0x38] sm:$0xff]  ;;  %v188_v4 = vld [vmem:[#allocation8 + $0x28] sm:$0xff]  ;;  %v189_v6 = vld [vmem:[#allocation8 + $0x30] sm:$0xff]  ;;  %309 = vmatprep.mubr.f32.mxu0 %v4570_v7  ;;  %422 = vmatprep.mubr.f32.mxu1 %v4570_v7  ;;  %102 = vst.msk [vmem:[#allocation2] sm:$0xff] %vm101_vm0, %v4570_v7  ;;  %s3610_s18 = sld [smem:[#allocation4 + $0x80]]  ;;  %s3612_s19 = sld [smem:[#allocation4 + $0x1]] }
  0x5a   :  { %v2598_v3 = vpack.c.bf16 %v190_v1, %v186_v0  ;;  %103 = vst.msk [vmem:[#allocation2 + $0x8] sm:$0xff] %vm101_vm0, %v4570_v7  ;;  %104 = vst.msk [vmem:[#allocation2 + $0x10] sm:$0xff] %vm101_vm0, %v4570_v7  ;;  %v2590_v8 = vpack.c.bf16 %v188_v4, %v184_v2  ;;  %v2600_v9 = vpack.c.bf16 %v189_v6, %v185_v5  ;;  %v183_v10 = vld [vmem:[#allocation8] sm:$0xff]  ;;  %v194_v12 = vld [vmem:[#allocation8 + $0x58] sm:$0xff]  ;;  %s3614_s20 = sld [smem:[#allocation4 + $0x81]]  ;;  %s3616_s21 = sld [smem:[#allocation4 + $0x2]] }
  0x5b   :  { %105 = vst.msk [vmem:[#allocation2 + $0x18] sm:$0xff] %vm101_vm0, %v4570_v7  ;;  %106 = vst.msk [vmem:[#allocation2 + $0x20] sm:$0xff] %vm101_vm0, %v4570_v7  ;;  %v187_v11 = vld [vmem:[#allocation8 + $0x20] sm:$0xff]  ;;  %v198_v14 = vld [vmem:[#allocation8 + $0x78] sm:$0xff]  ;;  %vm113_vm1 = vcmask 253952   ;;  %s3620_s23 = sld [smem:[#allocation4 + $0x82]] }
  0x5c   :  { %107 = vst.msk [vmem:[#allocation2 + $0x28] sm:$0xff] %vm101_vm0, %v4570_v7  ;;  %108 = vst.msk [vmem:[#allocation2 + $0x30] sm:$0xff] %vm101_vm0, %v4570_v7  ;;  %2599 = vmatprep.subr.bf16.mxu1 %v2598_v3  ;;  %v2592_v13 = vpack.c.bf16 %v187_v11, %v183_v10  ;;  %v192_v15 = vld [vmem:[#allocation8 + $0x48] sm:$0xff]  ;;  %2591 = vmatprep.subr.bf16.mxu0 %v2590_v8  ;;  %v2602_v17 = vpack.c.bf16 %v198_v14, %v194_v12  ;;  %v193_v19 = vld [vmem:[#allocation8 + $0x50] sm:$0xff]  ;;  %s3628_s27 = sld [smem:[#allocation4 + $0x3]]  ;;  %s3642_s3 = sld [smem:[#allocation4 + $0x4]] }
  0x5d   :  { %109 = vst.msk [vmem:[#allocation2 + $0x38] sm:$0xff] %vm101_vm0, %v4570_v7  ;;  %v196_v16 = vld [vmem:[#allocation8 + $0x68] sm:$0xff]  ;;  %2601 = vmatpush1.bf16.msra.mxu1 %v2600_v9  ;;  %v197_v20 = vld [vmem:[#allocation8 + $0x70] sm:$0xff]  ;;  %v191_v21 = vld [vmem:[#allocation8 + $0x40] sm:$0xff]  ;;  %s3634_s28 = sld [smem:[#allocation4 + $0x83]]  ;;  %s3650_s16 = sld [smem:[#allocation4 + $0x84]] }
  0x5e   :  { %v2594_v18 = vpack.c.bf16 %v196_v16, %v192_v15  ;;  %2593 = vmatpush1.bf16.msra.mxu0 %v2592_v13  ;;  %v2604_v22 = vpack.c.bf16 %v197_v20, %v193_v19  ;;  %v195_v23 = vld [vmem:[#allocation8 + $0x60] sm:$0xff]  ;;  %v543_v24 = vld [vmem:[#allocation9 + $0x18] sm:$0xff]  ;;  %2603 = vmatprep.subr.bf16.mxu1 %v2602_v17  ;;  %v541_v28 = vld [vmem:[#allocation9 + $0x8] sm:$0xff]  ;;  %s111_s26 = scalar_lea.vmem %s4561_s1, %s3594_s7  ;;  %s3669_s25 = sld [smem:[#allocation4 + $0x85]]  ;;  %vm3474_vm6 = vmmov 0  }
  0x5f   :  { %v547_v25 = vld [vmem:[#allocation9 + $0x38] sm:$0xff]  ;;  %v2596_v26 = vpack.c.bf16 %v195_v23, %v191_v21  ;;  %v545_v29 = vld [vmem:[#allocation9 + $0x28] sm:$0xff]  ;;  %v112_v31 = vld [vmem:[%s111_s26] sm:$0x1]  ;;  %s116_s22 = scalar_lea.vmem %s4561_s1, %s3610_s18  ;;  %s120_s12 = scalar_lea.vmem %s4561_s1, %s3612_s19 }
  0x60   :  { %2595 = vmatprep.subr.bf16.mxu0 %v2594_v18  ;;  %v3618_v27 = vpack.c.bf16 %v547_v25, %v543_v24  ;;  %v3626_v30 = vpack.c.bf16 %v545_v29, %v541_v28  ;;  %114 = vst.msk [vmem:[#allocation2] sm:$0x1] %vm113_vm1, %v112_v31  ;;  %v117_v32 = vld [vmem:[%s116_s22] sm:$0x1]  ;;  %s124_s15 = scalar_lea.vmem %s4561_s1, %s3614_s20  ;;  %v542_v34 = vld [vmem:[#allocation9 + $0x10] sm:$0xff]  ;;  %s128_s5 = scalar_lea.vmem %s4561_s1, %s3616_s21  ;;  %v551_v40 = vld [vmem:[#allocation9 + $0x58] sm:$0xff] }
  0x61   :  { %2605 = vmatpush1.bf16.msra.mxu1 %v2604_v22  ;;  %118 = vst.msk [vmem:[#allocation2 + $0x1] sm:$0x1] %vm113_vm1, %v117_v32  ;;  %v121_v33 = vld [vmem:[%s120_s12] sm:$0x1]  ;;  %v546_v35 = vld [vmem:[#allocation9 + $0x30] sm:$0xff]  ;;  %s132_s18 = scalar_lea.vmem %s4561_s1, %s3620_s23  ;;  %s3662_s19 = sld [smem:[#allocation4 + $0x5]] }
  0x62   :  { %4613 = vst [vmem:[#allocation20_spill] sm:$0xff] %v3618_v27  ;;  %4614 = vst [vmem:[#allocation21_spill] sm:$0xff] %v3626_v30  ;;  %2597 = vmatpush1.bf16.msra.mxu0 %v2596_v26  ;;  %2639 = vmatprep.subr.bf16.mxu1 %v3618_v27  ;;  %v125_v36 = vld [vmem:[%s124_s15] sm:$0x1]  ;;  %v555_v41 = vld [vmem:[#allocation9 + $0x78] sm:$0xff]  ;;  %s136_s21 = scalar_lea.vmem %s4561_s1, %s3628_s27  ;;  %v3676_v46 = vpack.c.bf16 %v546_v35, %v542_v34  ;;  %s3680_s27 = sld [smem:[#allocation4 + $0x6]] }
  0x63   :  { %2607 = vmatprep.subr.bf16.mxu0 %v3626_v30  ;;  %122 = vst.msk [vmem:[#allocation2 + $0x8] sm:$0x1] %vm113_vm1, %v121_v33  ;;  %v540_v37 = vld [vmem:[#allocation9] sm:$0xff]  ;;  %126 = vst.msk [vmem:[#allocation2 + $0x9] sm:$0x1] %vm113_vm1, %v125_v36  ;;  %v549_v43 = vld [vmem:[#allocation9 + $0x48] sm:$0xff]  ;;  %s140_s2 = scalar_lea.vmem %s4561_s1, %s3634_s28  ;;  %v3684_v55 = vpack.c.bf16 %v555_v41, %v551_v40  ;;  %s144_s29 = scalar_lea.vmem %s4561_s1, %s3642_s3 }
  0x64   :  { %v544_v38 = vld [vmem:[#allocation9 + $0x20] sm:$0xff]  ;;  %v553_v44 = vld [vmem:[#allocation9 + $0x68] sm:$0xff]  ;;  %v550_v45 = vld [vmem:[#allocation9 + $0x50] sm:$0xff]  ;;  %s3682_s0 = sld [smem:[#allocation4 + $0x86]]  ;;  %s148_s13 = scalar_lea.vmem %s4561_s1, %s3650_s16 }
  0x65   :  { %v129_v39 = vld [vmem:[%s128_s5] sm:$0x1]  ;;  %v3678_v47 = vpack.c.bf16 %v544_v38, %v540_v37  ;;  %v554_v48 = vld [vmem:[#allocation9 + $0x70] sm:$0xff]  ;;  %v559_v51 = vld [vmem:[#allocation9 + $0x98] sm:$0xff]  ;;  %v3686_v56 = vpack.c.bf16 %v553_v44, %v549_v43  ;;  %s3706_s3 = sld [smem:[#allocation4 + $0x7]]  ;;  %s156_s30 = scalar_lea.vmem %s4561_s1, %s3669_s25 }
  0x66   :  { %130 = vst.msk [vmem:[#allocation2 + $0x10] sm:$0x1] %vm113_vm1, %v129_v39  ;;  %v133_v42 = vld [vmem:[%s132_s18] sm:$0x1]  ;;  %v563_v57 = vld [vmem:[#allocation9 + $0xb8] sm:$0xff]  ;;  %v557_v58 = vld [vmem:[#allocation9 + $0x88] sm:$0xff]  ;;  %v3702_v63 = vpack.c.bf16 %v554_v48, %v550_v45 }
  0x67   :  { %134 = vst.msk [vmem:[#allocation2 + $0x11] sm:$0x1] %vm113_vm1, %v133_v42  ;;  %v548_v49 = vld [vmem:[#allocation9 + $0x40] sm:$0xff]  ;;  %v561_v59 = vld [vmem:[#allocation9 + $0xa8] sm:$0xff]  ;;  %v558_v60 = vld [vmem:[#allocation9 + $0x90] sm:$0xff]  ;;  %s152_s16 = scalar_lea.vmem %s4561_s1, %s3662_s19  ;;  %s3714_s11 = sld [smem:[#allocation4 + $0x87]]  ;;  %v3718_v5 = vpack.c.bf16 %v563_v57, %v559_v51 }
  0x68   :  { %v552_v50 = vld [vmem:[#allocation9 + $0x60] sm:$0xff]  ;;  %v562_v61 = vld [vmem:[#allocation9 + $0xb0] sm:$0xff]  ;;  %v3720_v6 = vpack.c.bf16 %v561_v59, %v557_v58  ;;  %v567_v8 = vld [vmem:[#allocation9 + $0xd8] sm:$0xff]  ;;  %s160_s19 = scalar_lea.vmem %s4561_s1, %s3680_s27  ;;  %s3475_s12 = smov [#allocation14]  }
  0x69   :  { %v137_v52 = vld [vmem:[%s136_s21] sm:$0x1]  ;;  %v3704_v0 = vpack.c.bf16 %v552_v50, %v548_v49  ;;  %v571_v9 = vld [vmem:[#allocation9 + $0xf8] sm:$0xff]  ;;  %v565_v10 = vld [vmem:[#allocation9 + $0xc8] sm:$0xff]  ;;  %v3732_v14 = vpack.c.bf16 %v562_v61, %v558_v60 }
  0x6a   :  { %v141_v53 = vld [vmem:[%s140_s2] sm:$0x1]  ;;  %138 = vst.msk [vmem:[#allocation2 + $0x18] sm:$0x1] %vm113_vm1, %v137_v52  ;;  %v176_v62 = vld [vmem:[#allocation2 + $0x8] sm:$0xff]  ;;  %v566_v12 = vld [vmem:[#allocation9 + $0xd0] sm:$0xff]  ;;  %s164_s21 = scalar_lea.vmem %s4561_s1, %s3682_s0  ;;  %v3749_v21 = vpack.c.bf16 %v571_v9, %v567_v8 }
  0x6b   :  { %v175_v54 = vld [vmem:[#allocation2] sm:$0xff]  ;;  %142 = vst.msk [vmem:[#allocation2 + $0x19] sm:$0x1] %vm113_vm1, %v141_v53  ;;  %v569_v11 = vld [vmem:[#allocation9 + $0xe8] sm:$0xff]  ;;  %v570_v16 = vld [vmem:[#allocation9 + $0xf0] sm:$0xff]  ;;  %s168_s23 = scalar_lea.vmem %s4561_s1, %s3706_s3 }
  0x6c   :  { %2421 = vmatmul.mubr.msk.f32.vlgmr.msra.gmra.mrb[0].mxu0 %vm101_vm0, %v175_v54  ;;  %2429 = vmatmul.mubr.msk.f32.vlgmr.msra.gmra.mrb[0].mxu1 %vm101_vm0, %v175_v54  ;;  %v556_v1 = vld [vmem:[#allocation9 + $0x80] sm:$0xff]  ;;  %v3751_v22 = vpack.c.bf16 %v569_v11, %v565_v10  ;;  %v575_v23 = vld [vmem:[#allocation9 + $0x118] sm:$0xff]  ;;  %v573_v25 = vld [vmem:[#allocation9 + $0x108] sm:$0xff]  ;;  %v3758_v31 = vpack.c.bf16 %v570_v16, %v566_v12 }
  0x6d   :  { %2641 = vmatpush1.bf16.msra.mxu1 %v3676_v46  ;;  %2609 = vmatpush1.bf16.msra.mxu0 %v3678_v47  ;;  %v560_v2 = vld [vmem:[#allocation9 + $0xa0] sm:$0xff]  ;;  %v579_v24 = vld [vmem:[#allocation9 + $0x138] sm:$0xff]  ;;  %v577_v26 = vld [vmem:[#allocation9 + $0x128] sm:$0xff]  ;;  %s172_s0 = scalar_lea.vmem %s4561_s1, %s3714_s11 }
  0x6e   :  { %315 = vmatprep.mubr.f32.mxu0 %v4570_v7  ;;  %428 = vmatprep.mubr.f32.mxu1 %v4570_v7  ;;  %v145_v3 = vld [vmem:[%s144_s29] sm:$0x1]  ;;  %v177_v13 = vld [vmem:[#allocation2 + $0x10] sm:$0xff]  ;;  %v3734_v15 = vpack.c.bf16 %v560_v2, %v556_v1  ;;  %v3776_v38 = vpack.c.bf16 %v579_v24, %v575_v23  ;;  %v3778_v39 = vpack.c.bf16 %v577_v26, %v573_v25  ;;  %v583_v40 = vld [vmem:[#allocation9 + $0x158] sm:$0xff] }
  0x6f   :  { %v149_v4 = vld [vmem:[%s148_s13] sm:$0x1]  ;;  %2643 = vmatprep.subr.bf16.mxu1 %v3684_v55  ;;  %2611 = vmatprep.subr.bf16.mxu0 %v3686_v56  ;;  %146 = vst.msk [vmem:[#allocation2 + $0x20] sm:$0x1] %vm113_vm1, %v145_v3  ;;  %v574_v28 = vld [vmem:[#allocation9 + $0x110] sm:$0xff]  ;;  %v587_v41 = vld [vmem:[#allocation9 + $0x178] sm:$0xff] }
  0x70   :  { %150 = vst.msk [vmem:[#allocation2 + $0x21] sm:$0x1] %vm113_vm1, %v149_v4  ;;  %2422 = vmatmul.mubr.msk.f32.gmra.mrb[2].mxu0 %vm101_vm0, %v176_v62  ;;  %2430 = vmatmul.mubr.msk.f32.gmra.mrb[2].mxu1 %vm101_vm0, %v176_v62  ;;  %v153_v17 = vld [vmem:[%s152_s16] sm:$0x1]  ;;  %v578_v35 = vld [vmem:[#allocation9 + $0x130] sm:$0xff]  ;;  %v581_v42 = vld [vmem:[#allocation9 + $0x148] sm:$0xff]  ;;  %v3794_v57 = vpack.c.bf16 %v587_v41, %v583_v40 }
  0x71   :  { %2645 = vmatpush1.bf16.msra.mxu1 %v3702_v63  ;;  %2613 = vmatpush1.bf16.msra.mxu0 %v3704_v0  ;;  %v564_v18 = vld [vmem:[#allocation9 + $0xc0] sm:$0xff]  ;;  %154 = vst.msk [vmem:[#allocation2 + $0x28] sm:$0x1] %vm113_vm1, %v153_v17  ;;  %v585_v43 = vld [vmem:[#allocation9 + $0x168] sm:$0xff]  ;;  %v582_v44 = vld [vmem:[#allocation9 + $0x150] sm:$0xff]  ;;  %v3784_v48 = vpack.c.bf16 %v578_v35, %v574_v28  ;;  %s2378_s13 = sshll.u32 %s3475_s12, 4  ;;  %s2379_s13 = int_to_ptr.vmem [resolvable:$true] %s2378_s13 }
  0x72   :  { %321 = vmatprep.mubr.f32.mxu0 %v4570_v7  ;;  %434 = vmatprep.mubr.f32.mxu1 %v4570_v7  ;;  %v568_v19 = vld [vmem:[#allocation9 + $0xe0] sm:$0xff]  ;;  %v178_v29 = vld [vmem:[#allocation2 + $0x18] sm:$0xff]  ;;  %v586_v52 = vld [vmem:[#allocation9 + $0x170] sm:$0xff]  ;;  %v3796_v58 = vpack.c.bf16 %v585_v43, %v581_v42  ;;  %s3431_s3 = scalar_lea.vmem %s2379_s13, 128  ;;  %p3436_p10 = scmp.lt.s32.totalorder %s2379_s13, %s2379_s13 }
  0x73   :  { %v157_v20 = vld [vmem:[%s156_s30] sm:$0x1]  ;;  %2647 = vmatprep.subr.bf16.mxu1 %v3718_v5  ;;  %2615 = vmatprep.subr.bf16.mxu0 %v3720_v6  ;;  %v3760_v32 = vpack.c.bf16 %v568_v19, %v564_v18  ;;  %v591_v59 = vld [vmem:[#allocation9 + $0x198] sm:$0xff]  ;;  %v589_v61 = vld [vmem:[#allocation9 + $0x188] sm:$0xff]  ;;  %v3802_v2 = vpack.c.bf16 %v586_v52, %v582_v44  ;;  %p3432_p9 = scmp.ne.s32.totalorder %s2379_s13, %s3431_s3  ;;  %p3437_p11 = scmp.lt.s32.totalorder %s3431_s3, %s3431_s3 }
  0x74   :  { %158 = vst.msk [vmem:[#allocation2 + $0x29] sm:$0x1] %vm113_vm1, %v157_v20  ;;  %2423 = vmatmul.mubr.msk.f32.gmra.mrb[4].mxu0 %vm101_vm0, %v177_v13  ;;  %2431 = vmatmul.mubr.msk.f32.gmra.mrb[4].mxu1 %vm101_vm0, %v177_v13  ;;  %v161_v33 = vld [vmem:[%s160_s19] sm:$0x1]  ;;  %v595_v60 = vld [vmem:[#allocation9 + $0x1b8] sm:$0xff]  ;;  %v593_v62 = vld [vmem:[#allocation9 + $0x1a8] sm:$0xff] }
  0x75   :  { %2649 = vmatpush1.bf16.msra.mxu1 %v3732_v14  ;;  %2617 = vmatpush1.bf16.msra.mxu0 %v3734_v15  ;;  %v165_v34 = vld [vmem:[%s164_s21] sm:$0x1]  ;;  %162 = vst.msk [vmem:[#allocation2 + $0x30] sm:$0x1] %vm113_vm1, %v161_v33  ;;  %v590_v4 = vld [vmem:[#allocation9 + $0x190] sm:$0xff]  ;;  %v3810_v11 = vpack.c.bf16 %v595_v60, %v591_v59  ;;  %v3812_v12 = vpack.c.bf16 %v593_v62, %v589_v61  ;;  %v599_v13 = vld [vmem:[#allocation9 + $0x1d8] sm:$0xff]  ;;  %p3438_p12 = por %p3437_p11, %p3436_p10 }
  0x76   :  { %327 = vmatprep.mubr.f32.mxu0 %v4570_v7  ;;  %440 = vmatprep.mubr.f32.mxu1 %v4570_v7  ;;  %v572_v36 = vld [vmem:[#allocation9 + $0x100] sm:$0xff]  ;;  %166 = vst.msk [vmem:[#allocation2 + $0x31] sm:$0x1] %vm113_vm1, %v165_v34  ;;  %v594_v8 = vld [vmem:[#allocation9 + $0x1b0] sm:$0xff]  ;;  %v603_v16 = vld [vmem:[#allocation9 + $0x1f8] sm:$0xff] }
  0x77   :  { %v576_v37 = vld [vmem:[#allocation9 + $0x120] sm:$0xff]  ;;  %2651 = vmatprep.subr.bf16.mxu1 %v3749_v21  ;;  %2619 = vmatprep.subr.bf16.mxu0 %v3751_v22  ;;  %v597_v17 = vld [vmem:[#allocation9 + $0x1c8] sm:$0xff]  ;;  %v3818_v20 = vpack.c.bf16 %v594_v8, %v590_v4  ;;  %v598_v24 = vld [vmem:[#allocation9 + $0x1d0] sm:$0xff]  ;;  %p3439_p13 = pnand %p3438_p12, %p3432_p9 }
  0x78   :  { %2424 = vmatmul.mubr.msk.f32.gmra.mrb[6].mxu0 %vm101_vm0, %v178_v29  ;;  %2432 = vmatmul.mubr.msk.f32.gmra.mrb[6].mxu1 %vm101_vm0, %v178_v29  ;;  %v179_v45 = vld [vmem:[#allocation2 + $0x20] sm:$0xff]  ;;  %v3786_v49 = vpack.c.bf16 %v576_v37, %v572_v36  ;;  %v601_v18 = vld [vmem:[#allocation9 + $0x1e8] sm:$0xff]  ;;  %v602_v25 = vld [vmem:[#allocation9 + $0x1f0] sm:$0xff]  ;;  %v3826_v29 = vpack.c.bf16 %v603_v16, %v599_v13  ;;  %v201_v37 = vlaneseq }
  0x79   :  { %2653 = vmatpush1.bf16.msra.mxu1 %v3758_v31  ;;  %2621 = vmatpush1.bf16.msra.mxu0 %v3760_v32  ;;  %v169_v50 = vld [vmem:[%s168_s23] sm:$0x1]  ;;  %v3828_v33 = vpack.c.bf16 %v601_v18, %v597_v17  ;;  %v3834_v35 = vpack.c.bf16 %v602_v25, %v598_v24 }
  0x7a   :  { %v173_v51 = vld [vmem:[%s172_s0] sm:$0x1]  ;;  %333 = vmatprep.mubr.f32.mxu0 %v4570_v7  ;;  %446 = vmatprep.mubr.f32.mxu1 %v4570_v7  ;;  %170 = vst.msk [vmem:[#allocation2 + $0x38] sm:$0x1] %vm113_vm1, %v169_v50  ;;  %v202_v40 = vshrl.u32 %v201_v37, 7  ;;  %v3905_v4 = vand.u32 127, %v201_v37 }
  0x7b   :  { %v580_v53 = vld [vmem:[#allocation9 + $0x140] sm:$0xff]  ;;  %174 = vst.msk [vmem:[#allocation2 + $0x39] sm:$0x1] %vm113_vm1, %v173_v51  ;;  %2655 = vmatprep.subr.bf16.mxu1 %v3776_v38  ;;  %2623 = vmatprep.subr.bf16.mxu0 %v3778_v39  ;;  %v180_v1 = vld [vmem:[#allocation2 + $0x28] sm:$0xff] }
  0x7c   :  { %v584_v54 = vld [vmem:[#allocation9 + $0x160] sm:$0xff]  ;;  %2425 = vmatmul.mubr.msk.f32.gmra.mrb[8].mxu0 %vm101_vm0, %v179_v45  ;;  %2433 = vmatmul.mubr.msk.f32.gmra.mrb[8].mxu1 %vm101_vm0, %v179_v45  ;;  %v211_v41 = vsub.s32 2, %v202_v40  ;;  %v203_v42 = vsub.s32 0, %v202_v40  ;;  %v215_v45 = vsub.s32 3, %v202_v40  ;;  %v207_v51 = vsub.s32 1, %v202_v40 }
  0x7d   :  { %2657 = vmatpush1.bf16.msra.mxu1 %v3784_v48  ;;  %2625 = vmatpush1.bf16.msra.mxu0 %v3786_v49  ;;  %v3804_v3 = vpack.c.bf16 %v584_v54, %v580_v53  ;;  %v588_v9 = vld [vmem:[#allocation9 + $0x180] sm:$0xff]  ;;  %v181_v19 = vld [vmem:[#allocation2 + $0x30] sm:$0xff]  ;;  %v506_v24 = vadd.s32 256, %v3905_v4  ;;  %v505_v37 = vadd.s32 128, %v3905_v4  ;;  %v507_v40 = vadd.s32 384, %v3905_v4 }
  0x7e   :  { %339 = vmatprep.mubr.f32.mxu0 %v4570_v7  ;;  %452 = vmatprep.mubr.f32.mxu1 %v4570_v7  ;;  %v592_v10 = vld [vmem:[#allocation9 + $0x1a0] sm:$0xff]  ;;  %vm524_vm2 = vcmp.lt.s32.totalorder %v3905_v4, 64 }
  0x7f   :  { %2659 = vmatprep.subr.bf16.mxu1 %v3794_v57  ;;  %2627 = vmatprep.subr.bf16.mxu0 %v3796_v58  ;;  %v3820_v23 = vpack.c.bf16 %v592_v10, %v588_v9  ;;  %v596_v26 = vld [vmem:[#allocation9 + $0x1c0] sm:$0xff] }
  0x80   :  { %2426 = vmatmul.mubr.msk.f32.gmra.mrb[10].mxu0 %vm101_vm0, %v180_v1  ;;  %2434 = vmatmul.mubr.msk.f32.gmra.mrb[10].mxu1 %vm101_vm0, %v180_v1  ;;  %v600_v28 = vld [vmem:[#allocation9 + $0x1e0] sm:$0xff] }
  0x81   :  { %2661 = vmatpush1.bf16.msra.mxu1 %v3802_v2  ;;  %2629 = vmatpush1.bf16.msra.mxu0 %v3804_v3  ;;  %v3836_v36 = vpack.c.bf16 %v600_v28, %v596_v26  ;;  %v199_v43 = vld [vmem:[%s4564_s4] sm:$0xf] }
  0x82   :  { %345 = vmatprep.mubr.f32.mxu0 %v4570_v7  ;;  %458 = vmatprep.mubr.f32.mxu1 %v4570_v7  ;;  %v182_v34 = vld [vmem:[#allocation2 + $0x38] sm:$0xff]  ;;  %v3897_v54 = vrot.slane %v199_v43, %v211_v41  ;;  %v3899_v59 = vrot.slane %v199_v43, %v203_v42  ;;  %v3901_v60 = vrot.slane %v199_v43, %v215_v45 }
  0x83   :  { %2663 = vmatprep.subr.bf16.mxu1 %v3810_v11  ;;  %2631 = vmatprep.subr.bf16.mxu0 %v3812_v12  ;;  %v3903_v61 = vrot.slane %v199_v43, %v207_v51  ;;  %v522_v51 = vand.u32 127, %v506_v24 }
  0x84   :  { %2427 = vmatmul.mubr.msk.f32.gmra.mrb[12].mxu0 %vm101_vm0, %v181_v19  ;;  %2435 = vmatmul.mubr.msk.f32.gmra.mrb[12].mxu1 %vm101_vm0, %v181_v19 }
  0x85   :  { %2665 = vmatpush1.bf16.msra.mxu1 %v3818_v20  ;;  %2633 = vmatpush1.bf16.msra.mxu0 %v3820_v23  ;;  %vm3943_vm3 = vcmp.lt.s32.totalorder %v522_v51, 64 }
  0x86   :  { %351 = vmatprep.mubr.f32.mxu0 %v4570_v7  ;;  %464 = vmatprep.mubr.f32.mxu1 %v4570_v7 }
  0x87   :  { %2667 = vmatprep.subr.bf16.mxu1 %v3826_v29  ;;  %2635 = vmatprep.subr.bf16.mxu0 %v3828_v33 }
  0x88   :  { %2428 = vmatmul.mubr.msk.f32.gmra.mrb[14].mxu0 %vm101_vm0, %v182_v34  ;;  %2436 = vmatmul.mubr.msk.f32.gmra.mrb[14].mxu1 %vm101_vm0, %v182_v34 }
  0x89   :  { %2669 = vmatpush1.bf16.msra.mxu1 %v3834_v35  ;;  %2637 = vmatpush1.bf16.msra.mxu0 %v3836_v36 }
  0x8a   :  { %668 = vmatprep.mubr.f32.mxu0 %v4570_v7  ;;  %739 = vmatprep.mubr.f32.mxu1 %v4570_v7 }
  0x8b   :  { %2671 = vmatprep.subr.bf16.mxu0 %v3626_v30  ;;  %2703 = vmatprep.subr.bf16.mxu1 %v3618_v27 }
  0x8c   :  { %669 = vmatmul.mubr.f32.vlgmr.msra.gmra.mrb[16].mxu0 %v4570_v7  ;;  %740 = vmatmul.mubr.f32.vlgmr.msra.gmra.mrb[16].mxu1 %v4570_v7 }
  0x8d   :  { %2673 = vmatpush1.bf16.msra.mxu0 %v3678_v47  ;;  %2705 = vmatpush1.bf16.msra.mxu1 %v3676_v46 }
  0x8e   :  { %2675 = vmatprep.subr.bf16.mxu0 %v3686_v56  ;;  %2707 = vmatprep.subr.bf16.mxu1 %v3684_v55 }
  0x8f   :  { %868 = vmatprep.mubr.f32.mxu0 %v4570_v7  ;;  %939 = vmatprep.mubr.f32.mxu1 %v4570_v7 }
  0x91   :  { %2677 = vmatpush1.bf16.msra.mxu0 %v3704_v0  ;;  %2709 = vmatpush1.bf16.msra.mxu1 %v3702_v63 }
  0x92   :  { %2679 = vmatprep.subr.bf16.mxu0 %v3720_v6  ;;  %2711 = vmatprep.subr.bf16.mxu1 %v3718_v5 }
  0x95   :  { %2681 = vmatpush1.bf16.msra.mxu0 %v3734_v15  ;;  %2713 = vmatpush1.bf16.msra.mxu1 %v3732_v14 }
  0x96   :  { %2683 = vmatprep.subr.bf16.mxu0 %v3751_v22  ;;  %2715 = vmatprep.subr.bf16.mxu1 %v3749_v21 }
  0x99   :  { %2685 = vmatpush1.bf16.msra.mxu0 %v3760_v32  ;;  %2717 = vmatpush1.bf16.msra.mxu1 %v3758_v31 }
  0x9a   :  { %2687 = vmatprep.subr.bf16.mxu0 %v3778_v39  ;;  %2719 = vmatprep.subr.bf16.mxu1 %v3776_v38 }
  0x9d   :  { %2689 = vmatpush1.bf16.msra.mxu0 %v3786_v49  ;;  %2721 = vmatpush1.bf16.msra.mxu1 %v3784_v48 }
  0x9e   :  { %2691 = vmatprep.subr.bf16.mxu0 %v3796_v58  ;;  %2723 = vmatprep.subr.bf16.mxu1 %v3794_v57 }
  0xa1   :  { %2693 = vmatpush1.bf16.msra.mxu0 %v3804_v3  ;;  %2725 = vmatpush1.bf16.msra.mxu1 %v3802_v2 }
  0xa2   :  { %2695 = vmatprep.subr.bf16.mxu0 %v3812_v12  ;;  %2727 = vmatprep.subr.bf16.mxu1 %v3810_v11 }
  0xa5   :  { %2697 = vmatpush1.bf16.msra.mxu0 %v3820_v23  ;;  %2729 = vmatpush1.bf16.msra.mxu1 %v3818_v20 }
  0xa6   :  { %2699 = vmatprep.subr.bf16.mxu0 %v3828_v33  ;;  %2731 = vmatprep.subr.bf16.mxu1 %v3826_v29 }
  0xa9   :  { %2701 = vmatpush1.bf16.msra.mxu0 %v3836_v36  ;;  %2733 = vmatpush1.bf16.msra.mxu1 %v3834_v35 }
  0xaa   :  { %2735 = vmatprep.subr.bf16.mxu0 %v3626_v30  ;;  %2767 = vmatprep.subr.bf16.mxu1 %v3618_v27 }
 0x13f   :  { %v3889_v44 = vpop.f32.mrb[0].mxu1  ;;  %v3891_v50 = vpop.f32.mrb[0].mxu0 }
 0x140   :  { %v3893_v52 = vpop.f32.mrb[1].mxu1  ;;  %v3895_v53 = vpop.f32.mrb[1].mxu0 }
 0x143   :  { %v430_v62 = vpop.f32.mrb[2].mxu1  ;;  %v317_v1 = vpop.f32.mrb[2].mxu0 }
 0x144   :  { %v3908_v8 = vadd.f32 %v430_v62, %v3897_v54  ;;  %v432_v9 = vpop.f32.mrb[3].mxu1  ;;  %v3911_v10 = vadd.f32 %v317_v1, %v3899_v59  ;;  %v319_v13 = vpop.f32.mrb[3].mxu0 }
 0x145   :  { %v3914_v16 = vadd.f32 %v432_v9, %v3901_v60  ;;  %v3917_v17 = vadd.f32 %v319_v13, %v3903_v61 }
 0x146   :  { %4615 = vst [vmem:[#allocation22_spill] sm:$0xff] %v3908_v8 }
 0x147   :  { %4616 = vst [vmem:[#allocation23_spill] sm:$0xff] %v3914_v16  ;;  %4617 = vst [vmem:[#allocation24_spill] sm:$0xff] %v3917_v17  ;;  %v436_v18 = vpop.f32.mrb[4].mxu1  ;;  %v323_v19 = vpop.f32.mrb[4].mxu0 }
 0x148   :  { %v3921_v25 = vadd.f32 %v436_v18, %v3897_v54  ;;  %v438_v26 = vpop.f32.mrb[5].mxu1  ;;  %v324_v28 = vadd.f32 %v323_v19, %v3899_v59  ;;  %v325_v34 = vpop.f32.mrb[5].mxu0  ;;  %v521_v18 = vand.u32 127, %v505_v37  ;;  %v523_v19 = vand.u32 127, %v507_v40 }
 0x149   :  { %v3927_v41 = vadd.f32 %v438_v26, %v3901_v60  ;;  %v3930_v42 = vadd.f32 %v325_v34, %v3903_v61 }
 0x14a   :  { %4618 = vst [vmem:[#allocation25_spill] sm:$0xff] %v3921_v25  ;;  %vm3951_vm4 = vcmp.lt.s32.totalorder %v521_v18, 64  ;;  %vm3955_vm5 = vcmp.lt.s32.totalorder %v523_v19, 64 }
 0x14b   :  { %4619 = vst [vmem:[#allocation26_spill] sm:$0xff] %v3927_v41  ;;  %4620 = vst [vmem:[#allocation27_spill] sm:$0xff] %v3930_v42  ;;  %v442_v43 = vpop.f32.mrb[6].mxu1  ;;  %v329_v45 = vpop.f32.mrb[6].mxu0 }
 0x14c   :  { %v3933_v62 = vadd.f32 %v442_v43, %v3897_v54  ;;  %v444_v1 = vpop.f32.mrb[7].mxu1  ;;  %v330_v9 = vadd.f32 %v329_v45, %v3899_v59  ;;  %v331_v13 = vpop.f32.mrb[7].mxu0 }
 0x14d   :  { %v3937_v7 = vadd.f32 %v444_v1, %v3901_v60  ;;  %v3940_v26 = vadd.f32 %v331_v13, %v3903_v61 }
 0x14e   :  { %4621 = vst [vmem:[#allocation28_spill] sm:$0xff] %v3933_v62 }
 0x14f   :  { %4622 = vst [vmem:[#allocation29_spill] sm:$0xff] %v3937_v7  ;;  %4623 = vst [vmem:[#allocation30_spill] sm:$0xff] %v3940_v26  ;;  %v335_v34 = vpop.f32.mrb[8].mxu0  ;;  %v448_v27 = vpop.f32.mrb[8].mxu1  ;;  %v312_v26 = vadd.f32 %v3891_v50, %v3899_v59 }
 0x150   :  { %v336_v43 = vadd.f32 %v335_v34, %v3899_v59  ;;  %v3949_v45 = vadd.f32 %v448_v27, %v3897_v54  ;;  %v337_v37 = vpop.f32.mrb[9].mxu0  ;;  %v450_v40 = vpop.f32.mrb[9].mxu1 }
 0x151   :  { %v3960_v51 = vadd.f32 %v337_v37, %v3903_v61  ;;  %v3963_v30 = vadd.f32 %v450_v40, %v3901_v60 }
 0x152   :  { %4626 = vst [vmem:[#allocation31_spill] sm:$0xff] %v3949_v45  ;;  %v3967_v27 = vsel %vm524_vm2, %v330_v9, %v336_v43  ;;  %v3975_v19 = vsel %vm524_vm2, %v336_v43, %v330_v9 }
 0x153   :  { %4631 = vst [vmem:[#allocation32_spill] sm:$0xff] %v3960_v51  ;;  %4632 = vst [vmem:[#allocation33_spill] sm:$0xff] %v3963_v30  ;;  %v341_v37 = vpop.f32.mrb[10].mxu0  ;;  %v454_v40 = vpop.f32.mrb[10].mxu1 }
 0x154   :  { %4633 = vst [vmem:[#allocation34_spill] sm:$0xff] %v3967_v27  ;;  %4634 = vst [vmem:[#allocation35_spill] sm:$0xff] %v3975_v19  ;;  %v342_v34 = vadd.f32 %v341_v37, %v3899_v59  ;;  %v3999_v19 = vadd.f32 %v454_v40, %v3897_v54  ;;  %v343_v27 = vpop.f32.mrb[11].mxu0  ;;  %v456_v45 = vpop.f32.mrb[11].mxu1 }
 0x155   :  { %v4002_v62 = vadd.f32 %v343_v27, %v3903_v61  ;;  %v4005_v18 = vadd.f32 %v456_v45, %v3901_v60 }
 0x156   :  { %4635 = vst [vmem:[#allocation36_spill] sm:$0xff] %v3999_v19  ;;  %v4009_v9 = vsel %vm524_vm2, %v324_v28, %v342_v34  ;;  %v4017_v40 = vsel %vm524_vm2, %v342_v34, %v324_v28 }
 0x157   :  { %4636 = vst [vmem:[#allocation37_spill] sm:$0xff] %v4002_v62  ;;  %4637 = vst [vmem:[#allocation38_spill] sm:$0xff] %v4005_v18  ;;  %v347_v45 = vpop.f32.mrb[12].mxu0  ;;  %v460_v43 = vpop.f32.mrb[12].mxu1 }
 0x158   :  { %4638 = vst [vmem:[#allocation39_spill] sm:$0xff] %v4009_v9  ;;  %4639 = vst [vmem:[#allocation40_spill] sm:$0xff] %v4017_v40  ;;  %v348_v27 = vadd.f32 %v347_v45, %v3899_v59  ;;  %v4041_v40 = vadd.f32 %v460_v43, %v3897_v54  ;;  %v349_v30 = vpop.f32.mrb[13].mxu0  ;;  %v462_v7 = vpop.f32.mrb[13].mxu1 }
 0x159   :  { %v4044_v51 = vadd.f32 %v349_v30, %v3903_v61  ;;  %v4047_v37 = vadd.f32 %v462_v7, %v3901_v60  ;;  %v4085_v7 = vadd.f32 %v3889_v44, %v3897_v54 }
 0x15a   :  { %4640 = vst [vmem:[#allocation41_spill] sm:$0xff] %v4041_v40  ;;  %v4052_v28 = vsel %vm524_vm2, %v3911_v10, %v348_v27  ;;  %v4061_v43 = vsel %vm524_vm2, %v348_v27, %v3911_v10  ;;  %v4095_v10 = vadd.f32 %v3893_v52, %v3901_v60  ;;  %v4099_v27 = vadd.f32 %v3895_v53, %v3903_v61 }
 0x15b   :  { %4641 = vst [vmem:[#allocation42_spill] sm:$0xff] %v4044_v51  ;;  %4642 = vst [vmem:[#allocation43_spill] sm:$0xff] %v4047_v37  ;;  %v353_v30 = vpop.f32.mrb[14].mxu0  ;;  %v466_v34 = vpop.f32.mrb[14].mxu1 }
 0x15c   :  { %4643 = vst [vmem:[#allocation44_spill] sm:$0xff] %v4061_v43  ;;  %4644 = vst [vmem:[#allocation45_spill] sm:$0xff] %v4085_v7  ;;  %v354_v43 = vadd.f32 %v353_v30, %v3899_v59  ;;  %v4091_v45 = vadd.f32 %v466_v34, %v3897_v54  ;;  %v355_v18 = vpop.f32.mrb[15].mxu0  ;;  %v468_v41 = vpop.f32.mrb[15].mxu1 }
 0x15d   :  { %4646 = vst [vmem:[#allocation47_spill] sm:$0xff] %v4095_v10  ;;  %4647 = vst [vmem:[#allocation48_spill] sm:$0xff] %v4099_v27  ;;  %v4102_v44 = vadd.f32 %v355_v18, %v3903_v61  ;;  %v4105_v50 = vadd.f32 %v468_v41, %v3901_v60 }
 0x15e   :  { %4645 = vst [vmem:[#allocation46_spill] sm:$0xff] %v4091_v45  ;;  %v536_v54 = vsel %vm524_vm2, %v312_v26, %v354_v43  ;;  %v538_v59 = vsel %vm3943_vm3, %v4085_v7, %v4091_v45  ;;  %v4115_v52 = vsel %vm524_vm2, %v354_v43, %v312_v26 }
 0x15f   :  { %4648 = vst [vmem:[#allocation49_spill] sm:$0xff] %v4102_v44  ;;  %4649 = vst [vmem:[#allocation50_spill] sm:$0xff] %v4105_v50  ;;  %v670_v61 = vpop.f32.mrb[16].mxu0  ;;  %v741_v60 = vpop.f32.mrb[16].mxu1  ;;  %v537_v41 = vsel %vm3951_vm4, %v4099_v27, %v4102_v44  ;;  %v539_v18 = vsel %vm3955_vm5, %v4095_v10, %v4105_v50 }
 0x160   :  { %4650 = vst [vmem:[#allocation51_spill] sm:$0xff] %v4115_v52  ;;  %v746_v34 = vadd.f32 %v670_v61, %v536_v54  ;;  %v748_v43 = vadd.f32 %v741_v60, %v538_v59  ;;  %v672_v30 = vpop.f32.mrb[17].mxu0  ;;  %v743_v53 = vpop.f32.mrb[17].mxu1 }
 0x161   :  { %v747_v7 = vadd.f32 %v672_v30, %v537_v41  ;;  %v749_v45 = vadd.f32 %v743_v53, %v539_v18 }
 0x162   :  { %v2437_v52 = vmul.f32 -1.442695, %v746_v34  ;;  %v2439_v62 = vmul.f32 -1.442695, %v748_v43  ;;  %v4654_v34 = vsel %vm3943_vm3, %v3908_v8, %v4041_v40 }
 0x163   :  { %v2438_v42 = vmul.f32 -1.442695, %v747_v7  ;;  %v2440_v4 = vmul.f32 -1.442695, %v749_v45 }
 0x164   :  { %3187 = vpow2.f32 %v2437_v52 }
 0x165   :  { %3189 = vpow2.f32 %v2439_v62 }
 0x166   :  { %3191 = vpow2.f32 %v2438_v42 }
 0x16e   :  { %v3188_v19 = vpop.eup %3187 }
 0x16f   :  { %v3190_v25 = vpop.eup %3189  ;;  %v762_v37 = vadd.f32 1.0, %v3188_v19 }
 0x170   :  { %v3192_v27 = vpop.eup %3191  ;;  %v764_v44 = vadd.f32 1.0, %v3190_v25 }
 0x171   :  { %v763_v9 = vadd.f32 1.0, %v3192_v27  ;;  %v4653_v27 = vld [vmem:[#allocation20_spill] sm:$0xff] }
 0x172   :  { %3193 = vrcp.f32 %v764_v44 }
 0x173   :  { %3195 = vpow2.f32 %v2440_v4 }
 0x174   :  { %3197 = vrcp.f32 %v763_v9  ;;  %v4651_v9 = vmov 0.0  }
 0x175   :  { %3199 = vrcp.f32 %v762_v37  ;;  %v4652_v37 = vld [vmem:[#allocation21_spill] sm:$0xff] }
 0x17c   :  { %v3194_v54 = vpop.eup %3193 }
 0x17d   :  { %v3196_v59 = vpop.eup %3195  ;;  %v776_v53 = vmul.f32 2.0, %v3194_v54 }
 0x17e   :  { %v3198_v61 = vpop.eup %3197  ;;  %v765_v52 = vadd.f32 1.0, %v3196_v59  ;;  %v4655_v59 = vsel %vm3951_vm4, %v3917_v17, %v4044_v51 }
 0x17f   :  { %v2443_v60 = vadd.f32 -1.0, %v776_v53  ;;  %v3200_v7 = vpop.eup %3199  ;;  %v786_v42 = vmul.f32 0.0, %v3198_v61  ;;  %v4656_v61 = vld [vmem:[#allocation43_spill] sm:$0xff] }
 0x180   :  { %3201 = vrcp.f32 %v765_v52 }
 0x181   :  { %v787_v62 = vmul.f32 %v3200_v7, %v2443_v60  ;;  %v4657_v60 = vsel %vm3955_vm5, %v3914_v16, %v4656_v61 }
 0x183   :  { %v4137_v41 = vadd.f32 %v787_v62, %v786_v42 }
 0x185   :  { %3203 = vtanh.f32 %v4137_v41 }
 0x18a   :  { %v3202_v25 = vpop.eup %3201 }
 0x18f   :  { %v3204_v19 = vpop.eup %3203 }
 0x190   :  { %v4140_v45 = vmul.f32 %v3204_v19, %v3202_v25 }
 0x192   :  { %869 = vmatmul.mubr.f32.vlgmr.msra.gmra.mrb[18].mxu0 %v4140_v45  ;;  %940 = vmatmul.mubr.f32.vlgmr.msra.gmra.mrb[18].mxu1 %v4140_v45 }
 0x193   :  { %2737 = vmatpush1.bf16.msra.mxu0 %v3678_v47  ;;  %2769 = vmatpush1.bf16.msra.mxu1 %v3676_v46 }
 0x194   :  { %2739 = vmatprep.subr.bf16.mxu0 %v3686_v56  ;;  %2771 = vmatprep.subr.bf16.mxu1 %v3684_v55 }
 0x195   :  { %1069 = vmatprep.mubr.f32.mxu0 %v4651_v9  ;;  %1140 = vmatprep.mubr.f32.mxu1 %v4651_v9 }
 0x197   :  { %2741 = vmatpush1.bf16.msra.mxu0 %v3704_v0  ;;  %2773 = vmatpush1.bf16.msra.mxu1 %v3702_v63 }
 0x198   :  { %2743 = vmatprep.subr.bf16.mxu0 %v3720_v6  ;;  %2775 = vmatprep.subr.bf16.mxu1 %v3718_v5 }
 0x19b   :  { %2745 = vmatpush1.bf16.msra.mxu0 %v3734_v15  ;;  %2777 = vmatpush1.bf16.msra.mxu1 %v3732_v14 }
 0x19c   :  { %2747 = vmatprep.subr.bf16.mxu0 %v3751_v22  ;;  %2779 = vmatprep.subr.bf16.mxu1 %v3749_v21 }
 0x19f   :  { %2749 = vmatpush1.bf16.msra.mxu0 %v3760_v32  ;;  %2781 = vmatpush1.bf16.msra.mxu1 %v3758_v31 }
 0x1a0   :  { %2751 = vmatprep.subr.bf16.mxu0 %v3778_v39  ;;  %2783 = vmatprep.subr.bf16.mxu1 %v3776_v38 }
 0x1a3   :  { %2753 = vmatpush1.bf16.msra.mxu0 %v3786_v49  ;;  %2785 = vmatpush1.bf16.msra.mxu1 %v3784_v48 }
 0x1a4   :  { %2755 = vmatprep.subr.bf16.mxu0 %v3796_v58  ;;  %2787 = vmatprep.subr.bf16.mxu1 %v3794_v57 }
 0x1a7   :  { %2757 = vmatpush1.bf16.msra.mxu0 %v3804_v3  ;;  %2789 = vmatpush1.bf16.msra.mxu1 %v3802_v2 }
 0x1a8   :  { %2759 = vmatprep.subr.bf16.mxu0 %v3812_v12  ;;  %2791 = vmatprep.subr.bf16.mxu1 %v3810_v11 }
 0x1ab   :  { %2761 = vmatpush1.bf16.msra.mxu0 %v3820_v23  ;;  %2793 = vmatpush1.bf16.msra.mxu1 %v3818_v20 }
 0x1ac   :  { %2763 = vmatprep.subr.bf16.mxu0 %v3828_v33  ;;  %2795 = vmatprep.subr.bf16.mxu1 %v3826_v29 }
 0x1af   :  { %2765 = vmatpush1.bf16.msra.mxu0 %v3836_v36  ;;  %2797 = vmatpush1.bf16.msra.mxu1 %v3834_v35 }
 0x1b0   :  { %2799 = vmatprep.subr.bf16.mxu0 %v4652_v37  ;;  %2831 = vmatprep.subr.bf16.mxu1 %v4653_v27 }
 0x265   :  { %v870_v44 = vpop.f32.mrb[18].mxu0  ;;  %v941_v18 = vpop.f32.mrb[18].mxu1 }
 0x266   :  { %v946_v4 = vadd.f32 %v870_v44, %v4052_v28  ;;  %v948_v43 = vadd.f32 %v941_v18, %v4654_v34  ;;  %v872_v30 = vpop.f32.mrb[19].mxu0  ;;  %v943_v54 = vpop.f32.mrb[19].mxu1 }
 0x267   :  { %v947_v53 = vadd.f32 %v872_v30, %v4655_v59  ;;  %v949_v28 = vadd.f32 %v943_v54, %v4657_v60 }
 0x268   :  { %v2445_v7 = vmul.f32 -1.442695, %v946_v4  ;;  %v2447_v52 = vmul.f32 -1.442695, %v948_v43 }
 0x269   :  { %v2446_v62 = vmul.f32 -1.442695, %v947_v53  ;;  %v2448_v19 = vmul.f32 -1.442695, %v949_v28 }
 0x26a   :  { %3205 = vpow2.f32 %v2445_v7 }
 0x26b   :  { %3207 = vpow2.f32 %v2447_v52 }
 0x26c   :  { %3209 = vpow2.f32 %v2446_v62 }
 0x274   :  { %v3206_v42 = vpop.eup %3205 }
 0x275   :  { %v3208_v25 = vpop.eup %3207  ;;  %v962_v26 = vadd.f32 1.0, %v3206_v42 }
 0x276   :  { %v3210_v44 = vpop.eup %3209  ;;  %v964_v18 = vadd.f32 1.0, %v3208_v25 }
 0x277   :  { %v963_v34 = vadd.f32 1.0, %v3210_v44 }
 0x278   :  { %3211 = vrcp.f32 %v964_v18  ;;  %v4659_v18 = vld [vmem:[#allocation25_spill] sm:$0xff] }
 0x279   :  { %3213 = vpow2.f32 %v2448_v19  ;;  %v4658_v19 = vld [vmem:[#allocation39_spill] sm:$0xff] }
 0x27a   :  { %3215 = vrcp.f32 %v963_v34  ;;  %v4660_v34 = vld [vmem:[#allocation36_spill] sm:$0xff] }
 0x27b   :  { %3217 = vrcp.f32 %v962_v26 }
 0x282   :  { %v3212_v30 = vpop.eup %3211 }
 0x283   :  { %v3214_v59 = vpop.eup %3213  ;;  %v976_v54 = vmul.f32 2.0, %v3212_v30  ;;  %v4661_v30 = vsel %vm3943_vm3, %v4659_v18, %v4660_v34 }
 0x284   :  { %v3216_v4 = vpop.eup %3215  ;;  %v965_v60 = vadd.f32 1.0, %v3214_v59 }
 0x285   :  { %v2451_v43 = vadd.f32 -1.0, %v976_v54  ;;  %v3218_v53 = vpop.eup %3217  ;;  %v986_v52 = vmul.f32 %v3216_v4, %v4137_v41 }
 0x286   :  { %3219 = vrcp.f32 %v965_v60 }
 0x287   :  { %v987_v7 = vmul.f32 %v3218_v53, %v2451_v43  ;;  %v4662_v43 = vld [vmem:[#allocation27_spill] sm:$0xff]  ;;  %v4663_v53 = vld [vmem:[#allocation37_spill] sm:$0xff] }
 0x288   :  { %v4664_v60 = vsel %vm3951_vm4, %v4662_v43, %v4663_v53 }
 0x289   :  { %v4195_v62 = vadd.f32 %v987_v7, %v986_v52  ;;  %v4665_v52 = vld [vmem:[#allocation26_spill] sm:$0xff] }
 0x28b   :  { %3221 = vtanh.f32 %v4195_v62 }
 0x290   :  { %v3220_v28 = vpop.eup %3219 }
 0x295   :  { %v3222_v42 = vpop.eup %3221 }
 0x296   :  { %v4198_v25 = vmul.f32 %v3222_v42, %v3220_v28  ;;  %v4666_v28 = vld [vmem:[#allocation38_spill] sm:$0xff] }
 0x297   :  { %v4667_v42 = vsel %vm3955_vm5, %v4665_v52, %v4666_v28 }
 0x298   :  { %1070 = vmatmul.mubr.f32.vlgmr.msra.gmra.mrb[20].mxu0 %v4198_v25  ;;  %1141 = vmatmul.mubr.f32.vlgmr.msra.gmra.mrb[20].mxu1 %v4198_v25 }
 0x299   :  { %2801 = vmatpush1.bf16.msra.mxu0 %v3678_v47  ;;  %2833 = vmatpush1.bf16.msra.mxu1 %v3676_v46 }
 0x29a   :  { %2803 = vmatprep.subr.bf16.mxu0 %v3686_v56  ;;  %2835 = vmatprep.subr.bf16.mxu1 %v3684_v55 }
 0x29b   :  { %1270 = vmatprep.mubr.f32.mxu0 %v4651_v9  ;;  %1341 = vmatprep.mubr.f32.mxu1 %v4651_v9 }
 0x29d   :  { %2805 = vmatpush1.bf16.msra.mxu0 %v3704_v0  ;;  %2837 = vmatpush1.bf16.msra.mxu1 %v3702_v63 }
 0x29e   :  { %2807 = vmatprep.subr.bf16.mxu0 %v3720_v6  ;;  %2839 = vmatprep.subr.bf16.mxu1 %v3718_v5 }
 0x2a1   :  { %2809 = vmatpush1.bf16.msra.mxu0 %v3734_v15  ;;  %2841 = vmatpush1.bf16.msra.mxu1 %v3732_v14 }
 0x2a2   :  { %2811 = vmatprep.subr.bf16.mxu0 %v3751_v22  ;;  %2843 = vmatprep.subr.bf16.mxu1 %v3749_v21 }
 0x2a5   :  { %2813 = vmatpush1.bf16.msra.mxu0 %v3760_v32  ;;  %2845 = vmatpush1.bf16.msra.mxu1 %v3758_v31 }
 0x2a6   :  { %2815 = vmatprep.subr.bf16.mxu0 %v3778_v39  ;;  %2847 = vmatprep.subr.bf16.mxu1 %v3776_v38 }
 0x2a9   :  { %2817 = vmatpush1.bf16.msra.mxu0 %v3786_v49  ;;  %2849 = vmatpush1.bf16.msra.mxu1 %v3784_v48 }
 0x2aa   :  { %2819 = vmatprep.subr.bf16.mxu0 %v3796_v58  ;;  %2851 = vmatprep.subr.bf16.mxu1 %v3794_v57 }
 0x2ad   :  { %2821 = vmatpush1.bf16.msra.mxu0 %v3804_v3  ;;  %2853 = vmatpush1.bf16.msra.mxu1 %v3802_v2 }
 0x2ae   :  { %2823 = vmatprep.subr.bf16.mxu0 %v3812_v12  ;;  %2855 = vmatprep.subr.bf16.mxu1 %v3810_v11 }
 0x2b1   :  { %2825 = vmatpush1.bf16.msra.mxu0 %v3820_v23  ;;  %2857 = vmatpush1.bf16.msra.mxu1 %v3818_v20 }
 0x2b2   :  { %2827 = vmatprep.subr.bf16.mxu0 %v3828_v33  ;;  %2859 = vmatprep.subr.bf16.mxu1 %v3826_v29 }
 0x2b5   :  { %2829 = vmatpush1.bf16.msra.mxu0 %v3836_v36  ;;  %2861 = vmatpush1.bf16.msra.mxu1 %v3834_v35 }
 0x2b6   :  { %2863 = vmatprep.subr.bf16.mxu0 %v4652_v37  ;;  %2895 = vmatprep.subr.bf16.mxu1 %v4653_v27 }
 0x36b   :  { %v1071_v26 = vpop.f32.mrb[20].mxu0  ;;  %v1142_v41 = vpop.f32.mrb[20].mxu1 }
 0x36c   :  { %v1147_v44 = vadd.f32 %v1071_v26, %v4658_v19  ;;  %v1149_v59 = vadd.f32 %v1142_v41, %v4661_v30  ;;  %v1073_v54 = vpop.f32.mrb[21].mxu0  ;;  %v1144_v4 = vpop.f32.mrb[21].mxu1 }
 0x36d   :  { %v1148_v7 = vadd.f32 %v1073_v54, %v4664_v60  ;;  %v1150_v26 = vadd.f32 %v1144_v4, %v4667_v42 }
 0x36e   :  { %v2453_v19 = vmul.f32 -1.442695, %v1147_v44  ;;  %v2455_v10 = vmul.f32 -1.442695, %v1149_v59 }
 0x36f   :  { %v2454_v50 = vmul.f32 -1.442695, %v1148_v7  ;;  %v2456_v16 = vmul.f32 -1.442695, %v1150_v26 }
 0x370   :  { %3223 = vpow2.f32 %v2453_v19 }
 0x371   :  { %3225 = vpow2.f32 %v2455_v10 }
 0x372   :  { %3227 = vpow2.f32 %v2454_v50 }
 0x37a   :  { %v3224_v41 = vpop.eup %3223 }
 0x37b   :  { %v3226_v30 = vpop.eup %3225  ;;  %v1163_v8 = vadd.f32 1.0, %v3224_v41 }
 0x37c   :  { %v3228_v61 = vpop.eup %3227  ;;  %v1165_v17 = vadd.f32 1.0, %v3226_v30 }
 0x37d   :  { %v1164_v51 = vadd.f32 1.0, %v3228_v61 }
 0x37e   :  { %3229 = vrcp.f32 %v1165_v17 }
 0x37f   :  { %3231 = vpow2.f32 %v2456_v16  ;;  %v992_v16 = vmax.f32 %v4140_v45, %v4198_v25 }
 0x380   :  { %3233 = vrcp.f32 %v1164_v51 }
 0x381   :  { %3235 = vrcp.f32 %v1163_v8  ;;  %v991_v8 = vadd.f32 %v4198_v25, %v4140_v45  ;;  %v4668_v25 = vld [vmem:[#allocation34_spill] sm:$0xff] }
 0x388   :  { %v3230_v54 = vpop.eup %3229 }
 0x389   :  { %v3232_v60 = vpop.eup %3231  ;;  %v1177_v4 = vmul.f32 2.0, %v3230_v54  ;;  %v4669_v54 = vld [vmem:[#allocation28_spill] sm:$0xff] }
 0x38a   :  { %v3234_v44 = vpop.eup %3233  ;;  %v1166_v42 = vadd.f32 1.0, %v3232_v60  ;;  %v4670_v60 = vld [vmem:[#allocation31_spill] sm:$0xff] }
 0x38b   :  { %v2459_v59 = vadd.f32 -1.0, %v1177_v4  ;;  %v3236_v7 = vpop.eup %3235  ;;  %v1187_v50 = vmul.f32 %v3234_v44, %v4195_v62  ;;  %v4671_v4 = vsel %vm3943_vm3, %v4669_v54, %v4670_v60 }
 0x38c   :  { %3237 = vrcp.f32 %v1166_v42  ;;  %v4672_v42 = vld [vmem:[#allocation30_spill] sm:$0xff] }
 0x38d   :  { %v1188_v10 = vmul.f32 %v3236_v7, %v2459_v59 }
 0x38f   :  { %v4253_v19 = vadd.f32 %v1188_v10, %v1187_v50  ;;  %v4673_v10 = vld [vmem:[#allocation32_spill] sm:$0xff] }
 0x390   :  { %v4674_v50 = vsel %vm3951_vm4, %v4672_v42, %v4673_v10 }
 0x391   :  { %3239 = vtanh.f32 %v4253_v19 }
 0x396   :  { %v3238_v61 = vpop.eup %3237 }
 0x39b   :  { %v3240_v17 = vpop.eup %3239 }
 0x39c   :  { %v1191_v51 = vmul.f32 %v3240_v17, %v3238_v61  ;;  %v4675_v17 = vld [vmem:[#allocation29_spill] sm:$0xff] }
 0x39e   :  { %v4260_v26 = vadd.f32 %v1191_v51, %v991_v8  ;;  %1271 = vmatmul.mubr.f32.vlgmr.msra.gmra.mrb[22].mxu0 %v1191_v51  ;;  %1342 = vmatmul.mubr.f32.vlgmr.msra.gmra.mrb[22].mxu1 %v1191_v51  ;;  %v4262_v41 = vmax.f32 %v992_v16, %v1191_v51  ;;  %v4676_v8 = vld [vmem:[#allocation33_spill] sm:$0xff] }
 0x39f   :  { %2865 = vmatpush1.bf16.msra.mxu0 %v3678_v47  ;;  %2897 = vmatpush1.bf16.msra.mxu1 %v3676_v46  ;;  %v4677_v16 = vsel %vm3955_vm5, %v4675_v17, %v4676_v8 }
 0x3a0   :  { %2867 = vmatprep.subr.bf16.mxu0 %v3686_v56  ;;  %2899 = vmatprep.subr.bf16.mxu1 %v3684_v55 }
 0x3a1   :  { %1463 = vmatprep.mubr.f32.mxu0 %v4651_v9  ;;  %1534 = vmatprep.mubr.f32.mxu1 %v4651_v9 }
 0x3a3   :  { %2869 = vmatpush1.bf16.msra.mxu0 %v3704_v0  ;;  %2901 = vmatpush1.bf16.msra.mxu1 %v3702_v63 }
 0x3a4   :  { %2871 = vmatprep.subr.bf16.mxu0 %v3720_v6  ;;  %2903 = vmatprep.subr.bf16.mxu1 %v3718_v5 }
 0x3a7   :  { %2873 = vmatpush1.bf16.msra.mxu0 %v3734_v15  ;;  %2905 = vmatpush1.bf16.msra.mxu1 %v3732_v14 }
 0x3a8   :  { %2875 = vmatprep.subr.bf16.mxu0 %v3751_v22  ;;  %2907 = vmatprep.subr.bf16.mxu1 %v3749_v21 }
 0x3ab   :  { %2877 = vmatpush1.bf16.msra.mxu0 %v3760_v32  ;;  %2909 = vmatpush1.bf16.msra.mxu1 %v3758_v31 }
 0x3ac   :  { %2879 = vmatprep.subr.bf16.mxu0 %v3778_v39  ;;  %2911 = vmatprep.subr.bf16.mxu1 %v3776_v38 }
 0x3af   :  { %2881 = vmatpush1.bf16.msra.mxu0 %v3786_v49  ;;  %2913 = vmatpush1.bf16.msra.mxu1 %v3784_v48 }
 0x3b0   :  { %2883 = vmatprep.subr.bf16.mxu0 %v3796_v58  ;;  %2915 = vmatprep.subr.bf16.mxu1 %v3794_v57 }
 0x3b3   :  { %2885 = vmatpush1.bf16.msra.mxu0 %v3804_v3  ;;  %2917 = vmatpush1.bf16.msra.mxu1 %v3802_v2 }
 0x3b4   :  { %2887 = vmatprep.subr.bf16.mxu0 %v3812_v12  ;;  %2919 = vmatprep.subr.bf16.mxu1 %v3810_v11 }
 0x3b7   :  { %2889 = vmatpush1.bf16.msra.mxu0 %v3820_v23  ;;  %2921 = vmatpush1.bf16.msra.mxu1 %v3818_v20 }
 0x3b8   :  { %2891 = vmatprep.subr.bf16.mxu0 %v3828_v33  ;;  %2923 = vmatprep.subr.bf16.mxu1 %v3826_v29 }
 0x3bb   :  { %2893 = vmatpush1.bf16.msra.mxu0 %v3836_v36  ;;  %2925 = vmatpush1.bf16.msra.mxu1 %v3834_v35 }
 0x3bc   :  { %2927 = vmatprep.subr.bf16.mxu0 %v4652_v37  ;;  %2959 = vmatprep.subr.bf16.mxu1 %v4653_v27 }
 0x471   :  { %v1272_v45 = vpop.f32.mrb[22].mxu0  ;;  %v1343_v62 = vpop.f32.mrb[22].mxu1 }
 0x472   :  { %v1348_v30 = vadd.f32 %v1272_v45, %v4668_v25  ;;  %v1350_v44 = vadd.f32 %v1343_v62, %v4671_v4  ;;  %v1274_v59 = vpop.f32.mrb[23].mxu0  ;;  %v1345_v7 = vpop.f32.mrb[23].mxu1 }
 0x473   :  { %v1349_v61 = vadd.f32 %v1274_v59, %v4674_v50  ;;  %v1351_v51 = vadd.f32 %v1345_v7, %v4677_v16 }
 0x474   :  { %v2461_v45 = vmul.f32 -1.442695, %v1348_v30  ;;  %v2463_v25 = vmul.f32 -1.442695, %v1350_v44 }
 0x475   :  { %v2462_v40 = vmul.f32 -1.442695, %v1349_v61  ;;  %v2464_v52 = vmul.f32 -1.442695, %v1351_v51  ;;  %v4678_v51 = vld [vmem:[#allocation35_spill] sm:$0xff] }
 0x476   :  { %3241 = vpow2.f32 %v2461_v45 }
 0x477   :  { %3243 = vpow2.f32 %v2463_v25 }
 0x478   :  { %3245 = vpow2.f32 %v2462_v40 }
 0x480   :  { %v3242_v62 = vpop.eup %3241 }
 0x481   :  { %v3244_v4 = vpop.eup %3243  ;;  %v1364_v18 = vadd.f32 1.0, %v3242_v62 }
 0x482   :  { %v3246_v28 = vpop.eup %3245  ;;  %v1366_v43 = vadd.f32 1.0, %v3244_v4  ;;  %v4679_v4 = vsel %vm3943_vm3, %v4670_v60, %v4669_v54 }
 0x483   :  { %v1365_v53 = vadd.f32 1.0, %v3246_v28 }
 0x484   :  { %3247 = vrcp.f32 %v1366_v43 }
 0x485   :  { %3249 = vpow2.f32 %v2464_v52 }
 0x486   :  { %3251 = vrcp.f32 %v1365_v53 }
 0x487   :  { %3253 = vrcp.f32 %v1364_v18 }
 0x48e   :  { %v3248_v59 = vpop.eup %3247 }
 0x48f   :  { %v3250_v50 = vpop.eup %3249  ;;  %v1378_v7 = vmul.f32 2.0, %v3248_v59 }
 0x490   :  { %v3252_v30 = vpop.eup %3251  ;;  %v1367_v16 = vadd.f32 1.0, %v3250_v50 }
 0x491   :  { %v2467_v44 = vadd.f32 -1.0, %v1378_v7  ;;  %v3254_v61 = vpop.eup %3253  ;;  %v1388_v40 = vmul.f32 %v3252_v30, %v4253_v19  ;;  %v4680_v30 = vsel %vm3951_vm4, %v4673_v10, %v4672_v42 }
 0x492   :  { %3255 = vrcp.f32 %v1367_v16 }
 0x493   :  { %v1389_v45 = vmul.f32 %v3254_v61, %v2467_v44  ;;  %v4681_v61 = vsel %vm3955_vm5, %v4676_v8, %v4675_v17 }
 0x495   :  { %v4315_v25 = vadd.f32 %v1389_v45, %v1388_v40 }
 0x497   :  { %3257 = vtanh.f32 %v4315_v25 }
 0x49c   :  { %v3256_v28 = vpop.eup %3255 }
 0x4a1   :  { %v3258_v43 = vpop.eup %3257 }
 0x4a2   :  { %v4318_v52 = vmul.f32 %v3258_v43, %v3256_v28 }
 0x4a4   :  { %v4322_v18 = vadd.f32 %v4318_v52, %v4260_v26  ;;  %1464 = vmatmul.mubr.f32.vlgmr.msra.gmra.mrb[24].mxu0 %v4318_v52  ;;  %1535 = vmatmul.mubr.f32.vlgmr.msra.gmra.mrb[24].mxu1 %v4318_v52  ;;  %v1394_v53 = vmax.f32 %v4262_v41, %v4318_v52  ;;  %v4682_v52 = vld [vmem:[#allocation40_spill] sm:$0xff] }
 0x4a5   :  { %2929 = vmatpush1.bf16.msra.mxu0 %v3678_v47  ;;  %2961 = vmatpush1.bf16.msra.mxu1 %v3676_v46 }
 0x4a6   :  { %2931 = vmatprep.subr.bf16.mxu0 %v3686_v56  ;;  %2963 = vmatprep.subr.bf16.mxu1 %v3684_v55 }
 0x4a7   :  { %1656 = vmatprep.mubr.f32.mxu0 %v4651_v9  ;;  %1727 = vmatprep.mubr.f32.mxu1 %v4651_v9 }
 0x4a9   :  { %2933 = vmatpush1.bf16.msra.mxu0 %v3704_v0  ;;  %2965 = vmatpush1.bf16.msra.mxu1 %v3702_v63 }
 0x4aa   :  { %2935 = vmatprep.subr.bf16.mxu0 %v3720_v6  ;;  %2967 = vmatprep.subr.bf16.mxu1 %v3718_v5 }
 0x4ad   :  { %2937 = vmatpush1.bf16.msra.mxu0 %v3734_v15  ;;  %2969 = vmatpush1.bf16.msra.mxu1 %v3732_v14 }
 0x4ae   :  { %2939 = vmatprep.subr.bf16.mxu0 %v3751_v22  ;;  %2971 = vmatprep.subr.bf16.mxu1 %v3749_v21 }
 0x4b1   :  { %2941 = vmatpush1.bf16.msra.mxu0 %v3760_v32  ;;  %2973 = vmatpush1.bf16.msra.mxu1 %v3758_v31 }
 0x4b2   :  { %2943 = vmatprep.subr.bf16.mxu0 %v3778_v39  ;;  %2975 = vmatprep.subr.bf16.mxu1 %v3776_v38 }
 0x4b5   :  { %2945 = vmatpush1.bf16.msra.mxu0 %v3786_v49  ;;  %2977 = vmatpush1.bf16.msra.mxu1 %v3784_v48 }
 0x4b6   :  { %2947 = vmatprep.subr.bf16.mxu0 %v3796_v58  ;;  %2979 = vmatprep.subr.bf16.mxu1 %v3794_v57 }
 0x4b9   :  { %2949 = vmatpush1.bf16.msra.mxu0 %v3804_v3  ;;  %2981 = vmatpush1.bf16.msra.mxu1 %v3802_v2 }
 0x4ba   :  { %2951 = vmatprep.subr.bf16.mxu0 %v3812_v12  ;;  %2983 = vmatprep.subr.bf16.mxu1 %v3810_v11 }
 0x4bd   :  { %2953 = vmatpush1.bf16.msra.mxu0 %v3820_v23  ;;  %2985 = vmatpush1.bf16.msra.mxu1 %v3818_v20 }
 0x4be   :  { %2955 = vmatprep.subr.bf16.mxu0 %v3828_v33  ;;  %2987 = vmatprep.subr.bf16.mxu1 %v3826_v29 }
 0x4c1   :  { %2957 = vmatpush1.bf16.msra.mxu0 %v3836_v36  ;;  %2989 = vmatpush1.bf16.msra.mxu1 %v3834_v35 }
 0x4c2   :  { %2991 = vmatprep.subr.bf16.mxu0 %v4652_v37  ;;  %3023 = vmatprep.subr.bf16.mxu1 %v4653_v27 }
 0x577   :  { %v1465_v19 = vpop.f32.mrb[24].mxu0  ;;  %v1536_v26 = vpop.f32.mrb[24].mxu1 }
 0x578   :  { %v1541_v62 = vadd.f32 %v1465_v19, %v4678_v51  ;;  %v1543_v59 = vadd.f32 %v1536_v26, %v4679_v4  ;;  %v1467_v50 = vpop.f32.mrb[25].mxu0  ;;  %v1538_v7 = vpop.f32.mrb[25].mxu1 }
 0x579   :  { %v1542_v44 = vadd.f32 %v1467_v50, %v4680_v30  ;;  %v1544_v16 = vadd.f32 %v1538_v7, %v4681_v61 }
 0x57a   :  { %v2469_v45 = vmul.f32 -1.442695, %v1541_v62  ;;  %v2471_v40 = vmul.f32 -1.442695, %v1543_v59 }
 0x57b   :  { %v2470_v28 = vmul.f32 -1.442695, %v1542_v44  ;;  %v2472_v43 = vmul.f32 -1.442695, %v1544_v16 }
 0x57c   :  { %3259 = vpow2.f32 %v2469_v45 }
 0x57d   :  { %3261 = vpow2.f32 %v2471_v40 }
 0x57e   :  { %3263 = vpow2.f32 %v2470_v28 }
 0x586   :  { %v3260_v54 = vpop.eup %3259 }
 0x587   :  { %v3262_v60 = vpop.eup %3261  ;;  %v1557_v42 = vadd.f32 1.0, %v3260_v54 }
 0x588   :  { %v3264_v19 = vpop.eup %3263  ;;  %v1559_v26 = vadd.f32 1.0, %v3262_v60 }
 0x589   :  { %v1558_v51 = vadd.f32 1.0, %v3264_v19 }
 0x58a   :  { %3265 = vrcp.f32 %v1559_v26  ;;  %v4685_v26 = vld [vmem:[#allocation37_spill] sm:$0xff] }
 0x58b   :  { %3267 = vpow2.f32 %v2472_v43 }
 0x58c   :  { %3269 = vrcp.f32 %v1558_v51  ;;  %v4686_v51 = vld [vmem:[#allocation27_spill] sm:$0xff] }
 0x58d   :  { %3271 = vrcp.f32 %v1557_v42  ;;  %v4687_v42 = vsel %vm3951_vm4, %v4685_v26, %v4686_v51 }
 0x594   :  { %v3266_v10 = vpop.eup %3265 }
 0x595   :  { %v3268_v17 = vpop.eup %3267  ;;  %v1571_v8 = vmul.f32 2.0, %v3266_v10  ;;  %v4689_v10 = vld [vmem:[#allocation26_spill] sm:$0xff] }
 0x596   :  { %v3270_v62 = vpop.eup %3269  ;;  %v1560_v50 = vadd.f32 1.0, %v3268_v17 }
 0x597   :  { %v2475_v4 = vadd.f32 -1.0, %v1571_v8  ;;  %v3272_v59 = vpop.eup %3271  ;;  %v1581_v30 = vmul.f32 %v3270_v62, %v4315_v25 }
 0x598   :  { %3273 = vrcp.f32 %v1560_v50 }
 0x599   :  { %v1582_v7 = vmul.f32 %v3272_v59, %v2475_v4 }
 0x59b   :  { %v4379_v44 = vadd.f32 %v1582_v7, %v1581_v30 }
 0x59d   :  { %3275 = vtanh.f32 %v4379_v44 }
 0x5a2   :  { %v3274_v61 = vpop.eup %3273 }
 0x5a7   :  { %v3276_v16 = vpop.eup %3275 }
 0x5a8   :  { %v1585_v45 = vmul.f32 %v3276_v16, %v3274_v61 }
 0x5aa   :  { %1657 = vmatmul.mubr.f32.vlgmr.msra.gmra.mrb[26].mxu0 %v1585_v45  ;;  %1728 = vmatmul.mubr.f32.vlgmr.msra.gmra.mrb[26].mxu1 %v1585_v45  ;;  %v4385_v40 = vmax.f32 %v1394_v53, %v1585_v45  ;;  %v4388_v28 = vadd.f32 %v1585_v45, %v4322_v18  ;;  %v4683_v53 = vld [vmem:[#allocation25_spill] sm:$0xff] }
 0x5ab   :  { %2993 = vmatpush1.bf16.msra.mxu0 %v3678_v47  ;;  %3025 = vmatpush1.bf16.msra.mxu1 %v3676_v46  ;;  %v4684_v54 = vsel %vm3943_vm3, %v4660_v34, %v4683_v53 }
 0x5ac   :  { %2995 = vmatprep.subr.bf16.mxu0 %v3686_v56  ;;  %3027 = vmatprep.subr.bf16.mxu1 %v3684_v55 }
 0x5ad   :  { %1849 = vmatprep.mubr.f32.mxu0 %v4651_v9  ;;  %1920 = vmatprep.mubr.f32.mxu1 %v4651_v9 }
 0x5af   :  { %2997 = vmatpush1.bf16.msra.mxu0 %v3704_v0  ;;  %3029 = vmatpush1.bf16.msra.mxu1 %v3702_v63 }
 0x5b0   :  { %2999 = vmatprep.subr.bf16.mxu0 %v3720_v6  ;;  %3031 = vmatprep.subr.bf16.mxu1 %v3718_v5 }
 0x5b3   :  { %3001 = vmatpush1.bf16.msra.mxu0 %v3734_v15  ;;  %3033 = vmatpush1.bf16.msra.mxu1 %v3732_v14 }
 0x5b4   :  { %3003 = vmatprep.subr.bf16.mxu0 %v3751_v22  ;;  %3035 = vmatprep.subr.bf16.mxu1 %v3749_v21 }
 0x5b7   :  { %3005 = vmatpush1.bf16.msra.mxu0 %v3760_v32  ;;  %3037 = vmatpush1.bf16.msra.mxu1 %v3758_v31 }
 0x5b8   :  { %3007 = vmatprep.subr.bf16.mxu0 %v3778_v39  ;;  %3039 = vmatprep.subr.bf16.mxu1 %v3776_v38 }
 0x5bb   :  { %3009 = vmatpush1.bf16.msra.mxu0 %v3786_v49  ;;  %3041 = vmatpush1.bf16.msra.mxu1 %v3784_v48 }
 0x5bc   :  { %3011 = vmatprep.subr.bf16.mxu0 %v3796_v58  ;;  %3043 = vmatprep.subr.bf16.mxu1 %v3794_v57 }
 0x5bf   :  { %3013 = vmatpush1.bf16.msra.mxu0 %v3804_v3  ;;  %3045 = vmatpush1.bf16.msra.mxu1 %v3802_v2 }
 0x5c0   :  { %3015 = vmatprep.subr.bf16.mxu0 %v3812_v12  ;;  %3047 = vmatprep.subr.bf16.mxu1 %v3810_v11 }
 0x5c3   :  { %3017 = vmatpush1.bf16.msra.mxu0 %v3820_v23  ;;  %3049 = vmatpush1.bf16.msra.mxu1 %v3818_v20 }
 0x5c4   :  { %3019 = vmatprep.subr.bf16.mxu0 %v3828_v33  ;;  %3051 = vmatprep.subr.bf16.mxu1 %v3826_v29 }
 0x5c7   :  { %3021 = vmatpush1.bf16.msra.mxu0 %v3836_v36  ;;  %3053 = vmatpush1.bf16.msra.mxu1 %v3834_v35 }
 0x5c8   :  { %3055 = vmatprep.subr.bf16.mxu0 %v4652_v37  ;;  %3087 = vmatprep.subr.bf16.mxu1 %v4653_v27  ;;  %v4688_v27 = vld [vmem:[#allocation38_spill] sm:$0xff] }
 0x5c9   :  { %v4690_v17 = vsel %vm3955_vm5, %v4688_v27, %v4689_v10 }
 0x67d   :  { %v1658_v41 = vpop.f32.mrb[26].mxu0  ;;  %v1729_v25 = vpop.f32.mrb[26].mxu1 }
 0x67e   :  { %v1734_v18 = vadd.f32 %v1658_v41, %v4682_v52  ;;  %v1736_v60 = vadd.f32 %v1729_v25, %v4684_v54  ;;  %v1660_v43 = vpop.f32.mrb[27].mxu0  ;;  %v1731_v19 = vpop.f32.mrb[27].mxu1 }
 0x67f   :  { %v1735_v37 = vadd.f32 %v1660_v43, %v4687_v42  ;;  %v1737_v8 = vadd.f32 %v1731_v19, %v4690_v17 }
 0x680   :  { %v2477_v62 = vmul.f32 -1.442695, %v1734_v18  ;;  %v2479_v4 = vmul.f32 -1.442695, %v1736_v60 }
 0x681   :  { %v2478_v59 = vmul.f32 -1.442695, %v1735_v37  ;;  %v2480_v7 = vmul.f32 -1.442695, %v1737_v8 }
 0x682   :  { %3277 = vpow2.f32 %v2477_v62 }
 0x683   :  { %3279 = vpow2.f32 %v2479_v4 }
 0x684   :  { %3281 = vpow2.f32 %v2478_v59 }
 0x68c   :  { %v3278_v34 = vpop.eup %3277 }
 0x68d   :  { %v3280_v50 = vpop.eup %3279  ;;  %v1750_v45 = vadd.f32 1.0, %v3278_v34 }
 0x68e   :  { %v3282_v30 = vpop.eup %3281  ;;  %v1752_v61 = vadd.f32 1.0, %v3280_v50 }
 0x68f   :  { %v1751_v16 = vadd.f32 1.0, %v3282_v30 }
 0x690   :  { %3283 = vrcp.f32 %v1752_v61 }
 0x691   :  { %3285 = vpow2.f32 %v2480_v7 }
 0x692   :  { %3287 = vrcp.f32 %v1751_v16 }
 0x693   :  { %3289 = vrcp.f32 %v1750_v45  ;;  %v2184_v45 = vld [vmem:[#allocation11 + $0x80] sm:$0xff] }
 0x69a   :  { %v3284_v41 = vpop.eup %3283 }
 0x69b   :  { %v3286_v25 = vpop.eup %3285  ;;  %v1764_v52 = vmul.f32 2.0, %v3284_v41  ;;  %v2185_v41 = vld [vmem:[#allocation11 + $0x88] sm:$0xff] }
 0x69c   :  { %v3288_v18 = vpop.eup %3287  ;;  %v1753_v60 = vadd.f32 1.0, %v3286_v25  ;;  %v3118_v25 = vpack.c.bf16 %v2185_v41, %v2184_v45  ;;  %v2284_v41 = vld [vmem:[#allocation12 + $0x30] sm:$0xff] }
 0x69d   :  { %v2483_v53 = vadd.f32 -1.0, %v1764_v52  ;;  %v3290_v54 = vpop.eup %3289  ;;  %v1774_v19 = vmul.f32 %v3288_v18, %v4379_v44  ;;  %v2168_v52 = vld [vmem:[#allocation11] sm:$0xff]  ;;  %v2169_v18 = vld [vmem:[#allocation11 + $0x8] sm:$0xff] }
 0x69e   :  { %3291 = vrcp.f32 %v1753_v60  ;;  %v2187_v60 = vld [vmem:[#allocation11 + $0x98] sm:$0xff] }
 0x69f   :  { %v1775_v43 = vmul.f32 %v3290_v54, %v2483_v53  ;;  %v3120_v53 = vpack.c.bf16 %v2169_v18, %v2168_v52  ;;  %v2186_v54 = vld [vmem:[#allocation11 + $0x90] sm:$0xff]  ;;  %v2286_v18 = vld [vmem:[#allocation12 + $0x40] sm:$0xff] }
 0x6a1   :  { %v4441_v26 = vadd.f32 %v1775_v43, %v1774_v19  ;;  %v3122_v43 = vpack.c.bf16 %v2187_v60, %v2186_v54  ;;  %v2170_v19 = vld [vmem:[#allocation11 + $0x10] sm:$0xff] }
 0x6a2   :  { %v2288_v60 = vld [vmem:[#allocation12 + $0x50] sm:$0xff] }
 0x6a3   :  { %3293 = vtanh.f32 %v4441_v26 }
 0x6a8   :  { %v3292_v51 = vpop.eup %3291 }
 0x6ad   :  { %v3294_v42 = vpop.eup %3293 }
 0x6ae   :  { %v4444_v37 = vmul.f32 %v3294_v42, %v3292_v51  ;;  %v2189_v42 = vld [vmem:[#allocation11 + $0xa8] sm:$0xff] }
 0x6b0   :  { %1850 = vmatmul.mubr.f32.vlgmr.msra.gmra.mrb[28].mxu0 %v4444_v37  ;;  %1921 = vmatmul.mubr.f32.vlgmr.msra.gmra.mrb[28].mxu1 %v4444_v37  ;;  %v1780_v27 = vmax.f32 %v4385_v40, %v4444_v37  ;;  %v4452_v10 = vadd.f32 %v4444_v37, %v4388_v28  ;;  %v2188_v40 = vld [vmem:[#allocation11 + $0xa0] sm:$0xff] }
 0x6b1   :  { %3057 = vmatpush1.bf16.msra.mxu0 %v3678_v47  ;;  %3089 = vmatpush1.bf16.msra.mxu1 %v3676_v46  ;;  %v3126_v37 = vpack.c.bf16 %v2189_v42, %v2188_v40  ;;  %v4701_v40 = vld [vmem:[#allocation51_spill] sm:$0xff] }
 0x6b2   :  { %3059 = vmatprep.subr.bf16.mxu0 %v3686_v56  ;;  %3091 = vmatprep.subr.bf16.mxu1 %v3684_v55  ;;  %v4691_v55 = vld [vmem:[#allocation44_spill] sm:$0xff] }
 0x6b3   :  { %2042 = vmatprep.mubr.f32.mxu0 %v4651_v9  ;;  %2113 = vmatprep.mubr.f32.mxu1 %v4651_v9 }
 0x6b5   :  { %3061 = vmatpush1.bf16.msra.mxu0 %v3704_v0  ;;  %3093 = vmatpush1.bf16.msra.mxu1 %v3702_v63  ;;  %v4692_v63 = vld [vmem:[#allocation41_spill] sm:$0xff]  ;;  %v4693_v0 = vld [vmem:[#allocation22_spill] sm:$0xff] }
 0x6b6   :  { %3063 = vmatprep.subr.bf16.mxu0 %v3720_v6  ;;  %3095 = vmatprep.subr.bf16.mxu1 %v3718_v5  ;;  %v4694_v5 = vsel %vm3943_vm3, %v4692_v63, %v4693_v0  ;;  %v2174_v63 = vld [vmem:[#allocation11 + $0x30] sm:$0xff]  ;;  %v2175_v0 = vld [vmem:[#allocation11 + $0x38] sm:$0xff] }
 0x6b9   :  { %3065 = vmatpush1.bf16.msra.mxu0 %v3734_v15  ;;  %3097 = vmatpush1.bf16.msra.mxu1 %v3732_v14 }
 0x6ba   :  { %3067 = vmatprep.subr.bf16.mxu0 %v3751_v22  ;;  %3099 = vmatprep.subr.bf16.mxu1 %v3749_v21  ;;  %v4695_v21 = vld [vmem:[#allocation42_spill] sm:$0xff]  ;;  %v4696_v22 = vld [vmem:[#allocation24_spill] sm:$0xff] }
 0x6bd   :  { %3069 = vmatpush1.bf16.msra.mxu0 %v3760_v32  ;;  %3101 = vmatpush1.bf16.msra.mxu1 %v3758_v31  ;;  %v4697_v31 = vsel %vm3951_vm4, %v4695_v21, %v4696_v22  ;;  %v2177_v21 = vld [vmem:[#allocation11 + $0x48] sm:$0xff] }
 0x6be   :  { %3071 = vmatprep.subr.bf16.mxu0 %v3778_v39  ;;  %3103 = vmatprep.subr.bf16.mxu1 %v3776_v38  ;;  %v4698_v38 = vld [vmem:[#allocation43_spill] sm:$0xff] }
 0x6bf   :  { %v4699_v39 = vld [vmem:[#allocation23_spill] sm:$0xff] }
 0x6c1   :  { %3073 = vmatpush1.bf16.msra.mxu0 %v3786_v49  ;;  %3105 = vmatpush1.bf16.msra.mxu1 %v3784_v48  ;;  %v4700_v48 = vsel %vm3955_vm5, %v4698_v38, %v4699_v39 }
 0x6c2   :  { %3075 = vmatprep.subr.bf16.mxu0 %v3796_v58  ;;  %3107 = vmatprep.subr.bf16.mxu1 %v3794_v57 }
 0x6c5   :  { %3077 = vmatpush1.bf16.msra.mxu0 %v3804_v3  ;;  %3109 = vmatpush1.bf16.msra.mxu1 %v3802_v2 }
 0x6c6   :  { %3079 = vmatprep.subr.bf16.mxu0 %v3812_v12  ;;  %3111 = vmatprep.subr.bf16.mxu1 %v3810_v11 }
 0x6c9   :  { %3081 = vmatpush1.bf16.msra.mxu0 %v3820_v23  ;;  %3113 = vmatpush1.bf16.msra.mxu1 %v3818_v20 }
 0x6ca   :  { %3083 = vmatprep.subr.bf16.mxu0 %v3828_v33  ;;  %3115 = vmatprep.subr.bf16.mxu1 %v3826_v29 }
 0x6cd   :  { %3085 = vmatpush1.bf16.msra.mxu0 %v3836_v36  ;;  %3117 = vmatpush1.bf16.msra.mxu1 %v3834_v35 }
 0x6ce   :  { %3119 = vmatprep.subr.bf16.mxu0 %v3118_v25  ;;  %v2285_v25 = vld [vmem:[#allocation12 + $0x38] sm:$0xff] }
 0x6cf   :  { %v3160_v52 = vpack.c.bf16 %v2285_v25, %v2284_v41 }
 0x783   :  { %v1851_v46 = vpop.f32.mrb[28].mxu0  ;;  %v1922_v47 = vpop.f32.mrb[28].mxu1 }
 0x784   :  { %v1927_v56 = vadd.f32 %v1851_v46, %v4691_v55  ;;  %v1929_v6 = vadd.f32 %v1922_v47, %v4694_v5  ;;  %v1853_v14 = vpop.f32.mrb[29].mxu0  ;;  %v1924_v15 = vpop.f32.mrb[29].mxu1  ;;  %v2190_v47 = vld [vmem:[#allocation11 + $0xb0] sm:$0xff]  ;;  %v2191_v55 = vld [vmem:[#allocation11 + $0xb8] sm:$0xff]  ;;  %v2192_v5 = vld [vmem:[#allocation11 + $0xc0] sm:$0xff] }
 0x785   :  { %v1928_v32 = vadd.f32 %v1853_v14, %v4697_v31  ;;  %v1930_v49 = vadd.f32 %v1924_v15, %v4700_v48  ;;  %v2193_v14 = vld [vmem:[#allocation11 + $0xc8] sm:$0xff]  ;;  %v2176_v15 = vld [vmem:[#allocation11 + $0x40] sm:$0xff]  ;;  %v2194_v31 = vld [vmem:[#allocation11 + $0xd0] sm:$0xff] }
 0x786   :  { %v2485_v57 = vmul.f32 -1.442695, %v1927_v56  ;;  %v2487_v58 = vmul.f32 -1.442695, %v1929_v6  ;;  %v3130_v56 = vpack.c.bf16 %v2191_v55, %v2190_v47  ;;  %v3132_v6 = vpack.c.bf16 %v2175_v0, %v2174_v63  ;;  %v2178_v48 = vld [vmem:[#allocation11 + $0x50] sm:$0xff]  ;;  %v4706_v63 = vld [vmem:[#allocation48_spill] sm:$0xff] }
 0x787   :  { %v2486_v2 = vmul.f32 -1.442695, %v1928_v32  ;;  %v2488_v12 = vmul.f32 -1.442695, %v1930_v49  ;;  %v3134_v22 = vpack.c.bf16 %v2193_v14, %v2192_v5  ;;  %v2195_v32 = vld [vmem:[#allocation11 + $0xd8] sm:$0xff]  ;;  %v3136_v38 = vpack.c.bf16 %v2177_v21, %v2176_v15  ;;  %v4709_v14 = vld [vmem:[#allocation47_spill] sm:$0xff] }
 0x788   :  { %3295 = vpow2.f32 %v2485_v57  ;;  %v3138_v39 = vpack.c.bf16 %v2195_v32, %v2194_v31  ;;  %v2179_v49 = vld [vmem:[#allocation11 + $0x58] sm:$0xff]  ;;  %v2196_v57 = vld [vmem:[#allocation11 + $0xe0] sm:$0xff] }
 0x789   :  { %3297 = vpow2.f32 %v2487_v58  ;;  %v2197_v58 = vld [vmem:[#allocation11 + $0xe8] sm:$0xff] }
 0x78a   :  { %3299 = vpow2.f32 %v2486_v2  ;;  %v3140_v2 = vpack.c.bf16 %v2179_v49, %v2178_v48 }
 0x792   :  { %v3296_v3 = vpop.eup %3295 }
 0x793   :  { %v3298_v11 = vpop.eup %3297  ;;  %v1943_v33 = vadd.f32 1.0, %v3296_v3  ;;  %v3142_v3 = vpack.c.bf16 %v2197_v58, %v2196_v57 }
 0x794   :  { %v3300_v20 = vpop.eup %3299  ;;  %v1945_v23 = vadd.f32 1.0, %v3298_v11  ;;  %v2180_v11 = vld [vmem:[#allocation11 + $0x60] sm:$0xff] }
 0x795   :  { %v1944_v29 = vadd.f32 1.0, %v3300_v20  ;;  %v2198_v20 = vld [vmem:[#allocation11 + $0xf0] sm:$0xff] }
 0x796   :  { %3301 = vrcp.f32 %v1945_v23  ;;  %v2199_v23 = vld [vmem:[#allocation11 + $0xf8] sm:$0xff] }
 0x797   :  { %3303 = vpow2.f32 %v2488_v12  ;;  %v2181_v12 = vld [vmem:[#allocation11 + $0x68] sm:$0xff] }
 0x798   :  { %3305 = vrcp.f32 %v1944_v29  ;;  %v3144_v29 = vpack.c.bf16 %v2181_v12, %v2180_v11 }
 0x799   :  { %3307 = vrcp.f32 %v1943_v33  ;;  %v3146_v33 = vpack.c.bf16 %v2199_v23, %v2198_v20 }
 0x7a0   :  { %v3302_v35 = vpop.eup %3301 }
 0x7a1   :  { %v3304_v36 = vpop.eup %3303  ;;  %v1957_v44 = vmul.f32 2.0, %v3302_v35  ;;  %v2182_v35 = vld [vmem:[#allocation11 + $0x70] sm:$0xff] }
 0x7a2   :  { %v3306_v28 = vpop.eup %3305  ;;  %v1946_v62 = vadd.f32 1.0, %v3304_v36  ;;  %v2183_v36 = vld [vmem:[#allocation11 + $0x78] sm:$0xff] }
 0x7a3   :  { %v2491_v17 = vadd.f32 -1.0, %v1957_v44  ;;  %v3308_v8 = vpop.eup %3307  ;;  %v1967_v59 = vmul.f32 %v3306_v28, %v4441_v26  ;;  %v2171_v26 = vld [vmem:[#allocation11 + $0x18] sm:$0xff]  ;;  %v3148_v44 = vpack.c.bf16 %v2183_v36, %v2182_v35  ;;  %v2278_v28 = vld [vmem:[#allocation12] sm:$0xff] }
 0x7a4   :  { %3309 = vrcp.f32 %v1946_v62  ;;  %v3124_v51 = vpack.c.bf16 %v2171_v26, %v2170_v19  ;;  %v3473_v62 = vmov 0.0|0.0  }
 0x7a5   :  { %v1968_v4 = vmul.f32 %v3308_v8, %v2491_v17  ;;  %v2279_v17 = vld [vmem:[#allocation12 + $0x8] sm:$0xff]  ;;  %v2280_v8 = vld [vmem:[#allocation12 + $0x10] sm:$0xff]  ;;  %3150 = vmatprep.subr.bf16.mxu1 %v3473_v62 }
 0x7a7   :  { %v4503_v34 = vadd.f32 %v1968_v4, %v1967_v59  ;;  %v3151_v4 = vpack.c.bf16 %v2279_v17, %v2278_v28  ;;  %v2281_v59 = vld [vmem:[#allocation12 + $0x18] sm:$0xff] }
 0x7a9   :  { %3311 = vtanh.f32 %v4503_v34 }
 0x7ae   :  { %v3310_v50 = vpop.eup %3309 }
 0x7b3   :  { %v3312_v7 = vpop.eup %3311 }
 0x7b4   :  { %v1971_v30 = vmul.f32 %v3312_v7, %v3310_v50  ;;  %v3154_v50 = vpack.c.bf16 %v2281_v59, %v2280_v8  ;;  %v2282_v7 = vld [vmem:[#allocation12 + $0x20] sm:$0xff]  ;;  %v2291_v59 = vld [vmem:[#allocation12 + $0x68] sm:$0xff] }
 0x7b6   :  { %2043 = vmatmul.mubr.f32.vlgmr.msra.gmra.mrb[30].mxu0 %v1971_v30  ;;  %2114 = vmatmul.mubr.f32.vlgmr.msra.gmra.mrb[30].mxu1 %v1971_v30  ;;  %v4509_v61 = vmax.f32 %v1780_v27, %v1971_v30  ;;  %v4512_v16 = vadd.f32 %v1971_v30, %v4452_v10  ;;  %v2172_v27 = vld [vmem:[#allocation11 + $0x20] sm:$0xff]  ;;  %v2173_v10 = vld [vmem:[#allocation11 + $0x28] sm:$0xff] }
 0x7b7   :  { %3121 = vmatpush3.bf16.msra.mxu0 %v3120_v53  ;;  %v3128_v46 = vpack.c.bf16 %v2173_v10, %v2172_v27  ;;  %3152 = vmatpush3.bf16.msra.mxu1 %v3151_v4  ;;  %v2283_v30 = vld [vmem:[#allocation12 + $0x28] sm:$0xff]  ;;  %v4703_v27 = vld [vmem:[#allocation45_spill] sm:$0xff]  ;;  %v2290_v4 = vld [vmem:[#allocation12 + $0x60] sm:$0xff] }
 0x7b8   :  { %3123 = vmatprep.subr.bf16.mxu0 %v3122_v43  ;;  %3153 = vmatprep.subr.bf16.mxu1 %v3473_v62  ;;  %v3157_v45 = vpack.c.bf16 %v2283_v30, %v2282_v7  ;;  %v2287_v53 = vld [vmem:[#allocation12 + $0x48] sm:$0xff]  ;;  %v2289_v43 = vld [vmem:[#allocation12 + $0x58] sm:$0xff] }
 0x7b9   :  { %v3163_v54 = vpack.c.bf16 %v2287_v53, %v2286_v18  ;;  %v3166_v19 = vpack.c.bf16 %v2289_v43, %v2288_v60  ;;  %v2293_v7 = vld [vmem:[#allocation12 + $0x78] sm:$0xff]  ;;  %2587 = vmatprep.mubr.msk.f32.mxu1 %vm3474_vm6, %v4651_v9 }
 0x7bb   :  { %3125 = vmatpush3.bf16.msra.mxu0 %v3124_v51  ;;  %3155 = vmatpush3.bf16.msra.mxu1 %v3154_v50  ;;  %v3169_v50 = vpack.c.bf16 %v2291_v59, %v2290_v4 }
 0x7bc   :  { %3127 = vmatprep.subr.bf16.mxu0 %v3126_v37  ;;  %3156 = vmatprep.subr.bf16.mxu1 %v3473_v62  ;;  %v4702_v37 = vld [vmem:[#allocation46_spill] sm:$0xff] }
 0x7bd   :  { %v4704_v10 = vsel %vm3943_vm3, %v4702_v37, %v4703_v27 }
 0x7bf   :  { %3129 = vmatpush3.bf16.msra.mxu0 %v3128_v46  ;;  %3158 = vmatpush3.bf16.msra.mxu1 %v3157_v45 }
 0x7c0   :  { %3131 = vmatprep.subr.bf16.mxu0 %v3130_v56  ;;  %3159 = vmatprep.subr.bf16.mxu1 %v3473_v62  ;;  %v4705_v56 = vld [vmem:[#allocation49_spill] sm:$0xff] }
 0x7c1   :  { %v4707_v0 = vsel %vm3951_vm4, %v4705_v56, %v4706_v63 }
 0x7c3   :  { %3133 = vmatpush3.bf16.msra.mxu0 %v3132_v6  ;;  %3161 = vmatpush3.bf16.msra.mxu1 %v3160_v52  ;;  %v4708_v6 = vld [vmem:[#allocation50_spill] sm:$0xff] }
 0x7c4   :  { %3135 = vmatprep.subr.bf16.mxu0 %v3134_v22  ;;  %3162 = vmatprep.subr.bf16.mxu1 %v3473_v62  ;;  %v4710_v15 = vsel %vm3955_vm5, %v4708_v6, %v4709_v14 }
 0x7c7   :  { %3137 = vmatpush3.bf16.msra.mxu0 %v3136_v38  ;;  %3164 = vmatpush3.bf16.msra.mxu1 %v3163_v54 }
 0x7c8   :  { %3139 = vmatprep.subr.bf16.mxu0 %v3138_v39  ;;  %3165 = vmatprep.subr.bf16.mxu1 %v3473_v62 }
 0x7cb   :  { %3141 = vmatpush3.bf16.msra.mxu0 %v3140_v2  ;;  %3167 = vmatpush3.bf16.msra.mxu1 %v3166_v19 }
 0x7cc   :  { %3143 = vmatprep.subr.bf16.mxu0 %v3142_v3  ;;  %3168 = vmatprep.subr.bf16.mxu1 %v3473_v62 }
 0x7cf   :  { %3145 = vmatpush3.bf16.msra.mxu0 %v3144_v29  ;;  %3170 = vmatpush3.bf16.msra.mxu1 %v3169_v50 }
 0x7d0   :  { %3147 = vmatprep.subr.bf16.mxu0 %v3146_v33  ;;  %3171 = vmatprep.subr.bf16.mxu1 %v3473_v62  ;;  %v2502_v62 = vld [vmem:[%s4568_s8] ss:$0 sm:$0xff] }
 0x7d3   :  { %3149 = vmatpush3.bf16.msra.mxu0 %v3148_v44 }
 0x889   :  { %v2044_v26 = vpop.f32.mrb[30].mxu0  ;;  %v2115_v51 = vpop.f32.mrb[30].mxu1 }
 0x88a   :  { %v2120_v42 = vadd.f32 %v2044_v26, %v4701_v40  ;;  %v2122_v46 = vadd.f32 %v2115_v51, %v4704_v10  ;;  %v2046_v47 = vpop.f32.mrb[31].mxu0  ;;  %v2117_v55 = vpop.f32.mrb[31].mxu1 }
 0x88b   :  { %v2121_v5 = vadd.f32 %v2046_v47, %v4707_v0  ;;  %v2123_v21 = vadd.f32 %v2117_v55, %v4710_v15 }
 0x88c   :  { %v2493_v22 = vmul.f32 -1.442695, %v2120_v42  ;;  %v2495_v24 = vmul.f32 -1.442695, %v2122_v46 }
 0x88d   :  { %v2494_v31 = vmul.f32 -1.442695, %v2121_v5  ;;  %v2496_v39 = vmul.f32 -1.442695, %v2123_v21 }
 0x88e   :  { %3313 = vpow2.f32 %v2493_v22 }
 0x88f   :  { %3315 = vpow2.f32 %v2495_v24 }
 0x890   :  { %3317 = vpow2.f32 %v2494_v31 }
 0x898   :  { %v3314_v32 = vpop.eup %3313 }
 0x899   :  { %v3316_v38 = vpop.eup %3315  ;;  %v2136_v57 = vadd.f32 1.0, %v3314_v32 }
 0x89a   :  { %v3318_v1 = vpop.eup %3317  ;;  %v2138_v48 = vadd.f32 1.0, %v3316_v38 }
 0x89b   :  { %v2137_v49 = vadd.f32 1.0, %v3318_v1 }
 0x89c   :  { %3319 = vrcp.f32 %v2138_v48 }
 0x89d   :  { %3321 = vpow2.f32 %v2496_v39 }
 0x89e   :  { %3323 = vrcp.f32 %v2137_v49 }
 0x89f   :  { %3325 = vrcp.f32 %v2136_v57 }
 0x8a6   :  { %v3320_v13 = vpop.eup %3319 }
 0x8a7   :  { %v3322_v58 = vpop.eup %3321  ;;  %v2150_v2 = vmul.f32 2.0, %v3320_v13 }
 0x8a8   :  { %v3324_v3 = vpop.eup %3323  ;;  %v2139_v20 = vadd.f32 1.0, %v3322_v58 }
 0x8a9   :  { %v2499_v11 = vadd.f32 -1.0, %v2150_v2  ;;  %v3326_v12 = vpop.eup %3325  ;;  %v2160_v29 = vmul.f32 %v3324_v3, %v4503_v34  ;;  %v2292_v34 = vld [vmem:[#allocation12 + $0x70] sm:$0xff] }
 0x8aa   :  { %3327 = vrcp.f32 %v2139_v20  ;;  %v3172_v30 = vpack.c.bf16 %v2293_v7, %v2292_v34 }
 0x8ab   :  { %v2161_v23 = vmul.f32 %v3326_v12, %v2499_v11 }
 0x8ac   :  { %3173 = vmatpush3.bf16.msra.mxu1 %v3172_v30 }
 0x8ad   :  { %v2162_v33 = vadd.f32 %v2161_v23, %v2160_v29 }
 0x8af   :  { %3329 = vtanh.f32 %v2162_v33 }
 0x8b4   :  { %v3328_v35 = vpop.eup %3327 }
 0x8b9   :  { %v3330_v36 = vpop.eup %3329 }
 0x8ba   :  { %v2164_v44 = vmul.f32 %v3330_v36, %v3328_v35 }
 0x8bc   :  { %v2166_v28 = vmax.f32 %v4509_v61, %v2164_v44  ;;  %v2165_v17 = vadd.f32 %v2164_v44, %v4512_v16  ;;  %v2501_v61 = vld [vmem:[%s4566_s6] ss:$0 sm:$0xff] }
 0x8be   :  { %2271 = vmatprep.mubr.f32.mxu0 %v2166_v28  ;;  %v2167_v8 = vmul.f32 0.125, %v2165_v17 }
 0x8c0   :  { %2272 = vmatmul.mubr.f32.vlgmr.msra.gmra.mrb[32].mxu0 %v2167_v8 }
 0x993   :  { %v2535_v45 = vpop.f32.mrb[32].mxu0 }
 0x994   :  { %v2536_v16 = vpop.f32.mrb[33].mxu0 }
 0x995   :  { %v2537_v41 = vadd.f32 %v2536_v16, %v2535_v45 }
 0x997   :  { %v2274_v25 = vadd.f32 %v2537_v41, %v2501_v61 }
 0x999   :  { %v2277_v52 = vmax.f32 %v2274_v25, 0.0 }
 0x99b   :  { %2588 = vmatmul.mubr.f32.vlgmr.msra.gmra.mrb[32].mxu1 %v2277_v52 }
 0xa6e   :  { %v2367_v18 = vpop.f32.mrb[32].mxu1 }
 0xa6f   :  { %v2368_v53 = vadd.f32 %v2502_v62, %v2367_v18  ;;  %v2589_v54 = vpop.f32.mrb[33].mxu1 }
 0xa71   :  { %2371 = vst [vmem:[#allocation14] sm:$0xff] %v2368_v53 }
 0xa72   :  { %3442 = shalt.err (!%p3439_p13)
}
 0xa73   :  { %s3443_s15 = scalar_lea.hbm %s4569_s9, 128 }
 0xa74   :  { %p3444_p0 = scmp.ne.s32.totalorder %s4569_s9, %s3443_s15  ;;  %p3447_p1 = scmp.lt.u32.totalorder %s3443_s15, %s4569_s9 }
 0xa76   :  { %p3449_p2 = pnand %p3447_p1, %p3444_p0 }
 0xa78   :  { %3452 = shalt.err (!%p3449_p2)
}
 0xa79   :  { %2381 = dma.vmem_to_hbm [thread:$0]  %s2379_s13, 128, %s4569_s9, [#allocation6]  }
 0xa7a   :  { %3461 = dma.done.wait [#allocation6], 128  }
 0xa7b   :  { %3462 = vsyncadd [#allocation6], 4294967168 }
 0xa7c   :  { %2385 = vsyncpa [#allocation5], 1 }
 0xa7d   :  { %2386 = vsyncpa [#allocation10], 1 }
 0xa7e   :  { %2387 = vsyncpa [#allocation13], 1 }
 0xa7f   :  { %2388 = vsyncpa [#allocation6], 1 }
 0xa80   :  { %2389 = vsyncpa [#allocation7], 1 }

</bundles_post_ra>
